<compile_context>
chip_gen: v7x
topology: tpu7x:2x2x1
jax: 0.10.0
libtpu: 0.0.40
codegen_flags: <defaults>
</compile_context>

<pallas_src>
import jax
import jax.numpy as jnp
import numpy as np
from jax.experimental import pallas as pl
from jax.experimental.pallas import tpu as pltpu

# ---------------- model dimensions (small, synthetic) ----------------
B = 2          # batch
N = 128        # points per cloud
C_IN = 6       # xyz + rgb
C_PAD = 8      # padded K for the layer-1 MXU matmul (w1 rows 6:8 are zero)
HID = 128      # per-point MLP hidden width
ENC = 1024     # point encoder output dim (Uni3D projection is 1024 -> out)
OUT = 128      # output_dim of the projection layer
TE = 256       # ENC chunk width per grid step


def uni3d_kernel(pc_ref, w1_ref, b1_ref, w2_ref, b2_ref, wp_ref, bp_ref,
                 out_ref, h_ref):
    """Grid = (ENC // TE,), reduction ('arbitrary') axis over ENC chunks.

    pc_ref : (B, N, 6)    f32   resident (same block every step)
    w1_ref : (C_PAD, HID) bf16  resident (rows 6:8 zero)
    b1_ref : (1, HID)     f32   resident
    w2_ref : (HID, TE)    bf16  streamed per chunk
    b2_ref : (1, TE)      f32   streamed per chunk
    wp_ref : (TE, OUT)    bf16  streamed per chunk
    bp_ref : (1, OUT)     f32   resident
    out_ref: (B, OUT)     f32   accumulator (same block every step)
    h_ref  : (B*N, HID)   bf16  VMEM scratch, layer-1 activations
    """
    c = pl.program_id(0)

    @pl.when(c == 0)
    def _():
        # ---- uni3d_pcd_mapping as a masked per-channel affine ----
        pc = pc_ref[...]                                            # [B, N, 6]
        ch = jax.lax.broadcasted_iota(jnp.int32, (1, 1, C_IN), 2)
        xyz_mask = (ch < 3).astype(jnp.float32)                     # [1, 1, 6]
        rgb_mask = (ch >= 3).astype(jnp.float32)

        mean_c = jnp.mean(pc, axis=1, keepdims=True)                # [B, 1, 6]
        centered = (pc - mean_c) * xyz_mask                         # xyz centered
        d2 = jnp.sum(centered * centered, axis=2, keepdims=True)    # [B, N, 1]
        furthest = jnp.sqrt(jnp.max(d2, axis=1, keepdims=True))     # [B, 1, 1]
        inv_f = 1.0 / (furthest + 1e-6)
        scale = xyz_mask * inv_f + rgb_mask * (1.0 / 255.0)
        feat = (pc - mean_c * xyz_mask) * scale                     # [B, N, 6]

        # ---- point encoder layer 1: (B*N, 8) @ (8, HID), bf16 on the MXU ----
        feat2d = feat.reshape(B * N, C_IN)
        feat_pad = jnp.concatenate(
            [feat2d, jnp.zeros((B * N, C_PAD - C_IN), feat2d.dtype)], axis=1)
        h = jnp.dot(feat_pad.astype(jnp.bfloat16), w1_ref[...],
                    preferred_element_type=jnp.float32) + b1_ref[...]
        h = jax.nn.gelu(h, approximate=True)                        # f32
        h_ref[...] = h.astype(jnp.bfloat16)

        # Initialize the output accumulator with the projection bias.
        out_ref[...] = jnp.broadcast_to(bp_ref[...], (B, OUT))

    # ---- fused layer-2 chunk + max pool + projection chunk ----
    # (b2 added after the pool: exact for a per-column constant shift.)
    f = jnp.dot(h_ref[...], w2_ref[...],
                preferred_element_type=jnp.float32)                 # [B*N, TE]
    pooled = jnp.max(f.reshape(B, N, TE), axis=1) + b2_ref[...]     # [B, TE]
    out_ref[...] += jnp.dot(pooled.astype(jnp.bfloat16), wp_ref[...],
                            preferred_element_type=jnp.float32)     # [B, OUT]


def prepare_params(params):
    """One-time parameter prep (padding + bf16 casts) — NOT on the per-call path."""
    w1 = jnp.pad(params["w1"], ((0, C_PAD - C_IN), (0, 0))).astype(jnp.bfloat16)
    return {
        "w1": w1,
        "b1": params["b1"].astype(jnp.float32),
        "w2": params["w2"].astype(jnp.bfloat16),
        "b2": params["b2"].astype(jnp.float32),
        "wp": params["wp"].astype(jnp.bfloat16),
        "bp": params["bp"].astype(jnp.float32),
    }


def uni3d_forward(pc, prep):
    """pc: [B, N, 6] float32, prep: prepare_params(...) output -> [B, OUT] f32."""
    flops = (2 * B * N * C_PAD * HID
             + 2 * B * N * HID * ENC
             + 2 * B * ENC * OUT)
    bytes_accessed = (pc.size * 4
                      + prep["w1"].size * 2 + prep["b1"].size * 4
                      + prep["w2"].size * 2 + prep["b2"].size * 4
                      + prep["wp"].size * 2 + prep["bp"].size * 4
                      + B * OUT * 4)
    cost = pl.CostEstimate(flops=flops,
                           transcendentals=B * N * HID,   # tanh inside gelu
                           bytes_accessed=bytes_accessed)

    grid_spec = pltpu.PrefetchScalarGridSpec(
        num_scalar_prefetch=0,
        grid=(ENC // TE,),
        in_specs=[
            pl.BlockSpec((B, N, C_IN), lambda c: (0, 0, 0)),   # pc   (resident)
            pl.BlockSpec((C_PAD, HID), lambda c: (0, 0)),      # w1   (resident)
            pl.BlockSpec((1, HID), lambda c: (0, 0)),          # b1   (resident)
            pl.BlockSpec((HID, TE), lambda c: (0, c)),         # w2   (streamed)
            pl.BlockSpec((1, TE), lambda c: (0, c)),           # b2   (streamed)
            pl.BlockSpec((TE, OUT), lambda c: (c, 0)),         # wp   (streamed)
            pl.BlockSpec((1, OUT), lambda c: (0, 0)),          # bp   (resident)
        ],
        out_specs=pl.BlockSpec((B, OUT), lambda c: (0, 0)),    # accumulator
        scratch_shapes=[pltpu.VMEM((B * N, HID), jnp.bfloat16)],
    )

    return pl.pallas_call(
        uni3d_kernel,
        out_shape=jax.ShapeDtypeStruct((B, OUT), jnp.float32),
        grid_spec=grid_spec,
        compiler_params=pltpu.CompilerParams(
            dimension_semantics=("arbitrary",)),
        cost_estimate=cost,
    )(pc, prep["w1"], prep["b1"], prep["w2"], prep["b2"],
      prep["wp"], prep["bp"])


def uni3d_reference(pc, prep):
    """Pure-JAX reference mirroring the PyTorch forward semantics, using the
    same bf16-quantized weights/activations the kernel uses (f32 accumulation)."""
    xyz = pc[:, :, :3]
    color = pc[:, :, 3:]
    # uni3d_pcd_mapping
    centroid = xyz.mean(axis=1, keepdims=True)
    xyz = xyz - centroid
    furthest = jnp.linalg.norm(xyz, axis=2).max(axis=1)[:, None, None]
    xyz = xyz / (furthest + 1e-6)
    color = color / 255.0
    feat = jnp.concatenate([xyz, color], axis=2)                    # [B, N, 6]
    # synthetic point encoder: per-point MLP -> max pool
    w1 = prep["w1"][:C_IN]                                          # bf16
    h = jnp.dot(feat.astype(jnp.bfloat16), w1,
                preferred_element_type=jnp.float32) + prep["b1"]
    h = jax.nn.gelu(h, approximate=True).astype(jnp.bfloat16)
    f = jnp.dot(h, prep["w2"], preferred_element_type=jnp.float32)  # [B, N, ENC]
    pooled = f.max(axis=1) + prep["b2"]                             # [B, ENC]
    # projection
    return jnp.dot(pooled.astype(jnp.bfloat16), prep["wp"],
                   preferred_element_type=jnp.float32) + prep["bp"]


def make_params(key):
    k1, k2, k3 = jax.random.split(key, 3)
    params = {
        "w1": 0.05 * jax.random.normal(k1, (C_IN, HID), jnp.float32),
        "b1": jnp.zeros((1, HID), jnp.float32),
        "w2": 0.05 * jax.random.normal(k2, (HID, ENC), jnp.float32),
        "b2": jnp.zeros((1, ENC), jnp.float32),
        "wp": 0.05 * jax.random.normal(k3, (ENC, OUT), jnp.float32),
        "bp": jnp.zeros((1, OUT), jnp.float32),
    }
    # logit_scale is a parameter of Uni3D but is unused in forward().
    params["logit_scale"] = jnp.array(np.log(1 / 0.07), jnp.float32)
    return params


if __name__ == "__main__":
    key = jax.random.PRNGKey(0)
    kx, kc, kp = jax.random.split(key, 3)

    xyz_in = jax.random.uniform(kx, (B, N, 3), jnp.float32, minval=-1.0, maxval=1.0)
    rgb_in = jax.random.uniform(kc, (B, N, 3), jnp.float32, minval=0.0, maxval=255.0)
    pc = jnp.concatenate([xyz_in, rgb_in], axis=2)                  # [B, N, 6]

    params = make_params(kp)
    prep = jax.block_until_ready(prepare_params(params))   # one-time weight prep

    out = jax.block_until_ready(uni3d_forward(pc, prep))
    ref = jax.block_until_ready(uni3d_reference(pc, prep))

    if not np.allclose(np.asarray(out), np.asarray(ref), rtol=2e-3, atol=2e-3):
        max_err = float(np.max(np.abs(np.asarray(out) - np.asarray(ref))))
        raise AssertionError(
            f"Pallas kernel output does not match JAX reference (max abs err {max_err})")

    print("KERNEL_OK")
</pallas_src>

<mosaic_0001>
module attributes {stable_mosaic.version = 11 : i64} {
  func.func @uni3d_kernel(%arg0: i32, %arg1: memref<2x128x6xf32, #tpu.memory_space<vmem>>, %arg2: memref<8x128xbf16, #tpu.memory_space<vmem>>, %arg3: memref<1x128xf32, #tpu.memory_space<vmem>>, %arg4: memref<128x256xbf16, #tpu.memory_space<vmem>>, %arg5: memref<1x256xf32, #tpu.memory_space<vmem>>, %arg6: memref<256x128xbf16, #tpu.memory_space<vmem>>, %arg7: memref<1x128xf32, #tpu.memory_space<vmem>>, %arg8: memref<2x128xf32, #tpu.memory_space<vmem>>, %arg9: memref<256x128xbf16, #tpu.memory_space<vmem>>) attributes {dimension_semantics = [#tpu.dimension_semantics<arbitrary>], iteration_bounds = array<i64: 4>, scalar_prefetch = 0 : i64, scratch_operands = 1 : i64, tpu.core_type = #tpu.core_type<tc>, window_params = [{pipeline_mode = #tpu.pipeline_mode<synchronous>, transform_indices = @transform_0, window_bounds = array<i64: 2, 128, 6>}, {pipeline_mode = #tpu.pipeline_mode<synchronous>, transform_indices = @transform_1, window_bounds = array<i64: 8, 128>}, {pipeline_mode = #tpu.pipeline_mode<synchronous>, transform_indices = @transform_2, window_bounds = array<i64: 1, 128>}, {transform_indices = @transform_3, window_bounds = array<i64: 128, 256>}, {transform_indices = @transform_4, window_bounds = array<i64: 1, 256>}, {transform_indices = @transform_5, window_bounds = array<i64: 256, 128>}, {pipeline_mode = #tpu.pipeline_mode<synchronous>, transform_indices = @transform_6, window_bounds = array<i64: 1, 128>}, {pipeline_mode = #tpu.pipeline_mode<synchronous>, transform_indices = @transform_7, window_bounds = array<i64: 2, 128>}]} {
    %c0_i32 = arith.constant 0 : i32
    %0 = arith.cmpi eq, %arg0, %c0_i32 : i32
    %1 = arith.extui %0 : i1 to i32
    %c0_i32_0 = arith.constant 0 : i32
    %2 = arith.cmpi ne, %1, %c0_i32_0 : i32
    scf.if %2 {
      %c0_14 = arith.constant 0 : index
      %c0_15 = arith.constant 0 : index
      %c0_16 = arith.constant 0 : index
      %17 = vector.load %arg1[%c0_14, %c0_15, %c0_16] : memref<2x128x6xf32, #tpu.memory_space<vmem>>, vector<2x128x6xf32>
      %18 = tpu.iota {dimensions = array<i32: 2>} : vector<1x1x6xi32>
      %c3_i32 = arith.constant 3 : i32
      %19 = vector.broadcast %c3_i32 : i32 to vector<1x1x6xi32>
      %20 = arith.cmpi slt, %18, %19 : vector<1x1x6xi32>
      %21 = arith.extui %20 : vector<1x1x6xi1> to vector<1x1x6xi32>
      %22 = arith.sitofp %21 : vector<1x1x6xi32> to vector<1x1x6xf32>
      %c3_i32_17 = arith.constant 3 : i32
      %23 = vector.broadcast %c3_i32_17 : i32 to vector<1x1x6xi32>
      %24 = arith.cmpi sge, %18, %23 : vector<1x1x6xi32>
      %25 = arith.extui %24 : vector<1x1x6xi1> to vector<1x1x6xi32>
      %26 = arith.sitofp %25 : vector<1x1x6xi32> to vector<1x1x6xf32>
      %cst_18 = arith.constant dense<0.000000e+00> : vector<2x6xf32>
      %27 = vector.multi_reduction <add>, %17, %cst_18 [1] : vector<2x128x6xf32> to vector<2x6xf32>
      %28 = vector.shape_cast %27 : vector<2x6xf32> to vector<2x1x6xf32>
      %cst_19 = arith.constant 1.280000e+02 : f32
      %29 = vector.broadcast %cst_19 : f32 to vector<2x1x6xf32>
      %30 = arith.divf %28, %29 : vector<2x1x6xf32>
      %31 = vector.broadcast %30 : vector<2x1x6xf32> to vector<2x128x6xf32>
      %32 = arith.subf %17, %31 : vector<2x128x6xf32>
      %33 = vector.broadcast %22 : vector<1x1x6xf32> to vector<2x128x6xf32>
      %34 = arith.mulf %32, %33 : vector<2x128x6xf32>
      %35 = arith.mulf %34, %34 : vector<2x128x6xf32>
      %cst_20 = arith.constant dense<0.000000e+00> : vector<2x128xf32>
      %36 = vector.multi_reduction <add>, %35, %cst_20 [2] : vector<2x128x6xf32> to vector<2x128xf32>
      %37 = vector.shape_cast %36 : vector<2x128xf32> to vector<2x128x1xf32>
      %cst_21 = arith.constant dense<0xFF800000> : vector<2x1xf32>
      %38 = vector.multi_reduction <maximumf>, %37, %cst_21 [1] : vector<2x128x1xf32> to vector<2x1xf32>
      %39 = vector.shape_cast %38 : vector<2x1xf32> to vector<2x1x1xf32>
      %40 = math.sqrt %39 : vector<2x1x1xf32>
      %cst_22 = arith.constant 9.99999997E-7 : f32
      %41 = vector.broadcast %cst_22 : f32 to vector<2x1x1xf32>
      %42 = arith.addf %40, %41 : vector<2x1x1xf32>
      %cst_23 = arith.constant 1.000000e+00 : f32
      %43 = vector.broadcast %cst_23 : f32 to vector<2x1x1xf32>
      %44 = arith.divf %43, %42 : vector<2x1x1xf32>
      %45 = vector.broadcast %22 : vector<1x1x6xf32> to vector<2x1x6xf32>
      %46 = vector.broadcast %44 : vector<2x1x1xf32> to vector<2x1x6xf32>
      %47 = arith.mulf %45, %46 : vector<2x1x6xf32>
      %cst_24 = arith.constant 0.00392156886 : f32
      %48 = vector.broadcast %cst_24 : f32 to vector<1x1x6xf32>
      %49 = arith.mulf %26, %48 : vector<1x1x6xf32>
      %50 = vector.broadcast %49 : vector<1x1x6xf32> to vector<2x1x6xf32>
      %51 = arith.addf %47, %50 : vector<2x1x6xf32>
      %52 = vector.broadcast %22 : vector<1x1x6xf32> to vector<2x1x6xf32>
      %53 = arith.mulf %30, %52 : vector<2x1x6xf32>
      %54 = vector.broadcast %53 : vector<2x1x6xf32> to vector<2x128x6xf32>
      %55 = arith.subf %17, %54 : vector<2x128x6xf32>
      %56 = vector.broadcast %51 : vector<2x1x6xf32> to vector<2x128x6xf32>
      %57 = arith.mulf %55, %56 : vector<2x128x6xf32>
      %58 = vector.shape_cast %57 : vector<2x128x6xf32> to vector<256x6xf32>
      %cst_25 = arith.constant 0.000000e+00 : f32
      %59 = vector.broadcast %cst_25 : f32 to vector<256x2xf32>
      %60 = tpu.concatenate %58, %59 in 1 : vector<256x6xf32>, vector<256x2xf32> -> vector<256x8xf32>
      %61 = arith.truncf %60 : vector<256x8xf32> to vector<256x8xbf16>
      %c0_26 = arith.constant 0 : index
      %c0_27 = arith.constant 0 : index
      %62 = vector.load %arg2[%c0_26, %c0_27] : memref<8x128xbf16, #tpu.memory_space<vmem>>, vector<8x128xbf16>
      %cst_28 = arith.constant dense<0.000000e+00> : vector<256x128xf32>
      %63 = tpu.matmul %61, %62, %cst_28 {dimension_numbers = #tpu.dot_dimension_numbers<[1], [0], [0], [1], [0, 0, 1, 1], [], []>} : vector<256x8xbf16>, vector<8x128xbf16>, vector<256x128xf32> -> vector<256x128xf32>
      %c0_29 = arith.constant 0 : index
      %c0_30 = arith.constant 0 : index
      %64 = vector.load %arg3[%c0_29, %c0_30] : memref<1x128xf32, #tpu.memory_space<vmem>>, vector<1x128xf32>
      %65 = vector.broadcast %64 : vector<1x128xf32> to vector<256x128xf32>
      %66 = arith.addf %63, %65 : vector<256x128xf32>
      %67 = arith.mulf %66, %66 : vector<256x128xf32>
      %68 = arith.mulf %66, %67 : vector<256x128xf32>
      %cst_31 = arith.constant 4.471500e-02 : f32
      %69 = vector.broadcast %cst_31 : f32 to vector<256x128xf32>
      %70 = arith.mulf %69, %68 : vector<256x128xf32>
      %71 = arith.addf %66, %70 : vector<256x128xf32>
      %cst_32 = arith.constant 0.797884583 : f32
      %72 = vector.broadcast %cst_32 : f32 to vector<256x128xf32>
      %73 = arith.mulf %72, %71 : vector<256x128xf32>
      %74 = math.tanh %73 : vector<256x128xf32>
      %cst_33 = arith.constant 1.000000e+00 : f32
      %75 = vector.broadcast %cst_33 : f32 to vector<256x128xf32>
      %76 = arith.addf %75, %74 : vector<256x128xf32>
      %cst_34 = arith.constant 5.000000e-01 : f32
      %77 = vector.broadcast %cst_34 : f32 to vector<256x128xf32>
      %78 = arith.mulf %77, %76 : vector<256x128xf32>
      %79 = arith.mulf %66, %78 : vector<256x128xf32>
      %80 = arith.truncf %79 : vector<256x128xf32> to vector<256x128xbf16>
      %c0_35 = arith.constant 0 : index
      %c0_36 = arith.constant 0 : index
      %81 = vector.load %arg9[%c0_35, %c0_36] : memref<256x128xbf16, #tpu.memory_space<vmem>>, vector<256x128xbf16>
      tpu.vector_store %arg9[%c0_35, %c0_36], %80 {strides = array<i32>} : memref<256x128xbf16, #tpu.memory_space<vmem>>, vector<256x128xbf16>,
      %c0_37 = arith.constant 0 : index
      %c0_38 = arith.constant 0 : index
      %82 = vector.load %arg7[%c0_37, %c0_38] : memref<1x128xf32, #tpu.memory_space<vmem>>, vector<1x128xf32>
      %83 = vector.shape_cast %82 : vector<1x128xf32> to vector<1x128xf32>
      %84 = vector.broadcast %83 : vector<1x128xf32> to vector<2x128xf32>
      %c0_39 = arith.constant 0 : index
      %c0_40 = arith.constant 0 : index
      %85 = vector.load %arg8[%c0_39, %c0_40] : memref<2x128xf32, #tpu.memory_space<vmem>>, vector<2x128xf32>
      tpu.vector_store %arg8[%c0_39, %c0_40], %84 {strides = array<i32>} : memref<2x128xf32, #tpu.memory_space<vmem>>, vector<2x128xf32>,
    } else {
    }
    %c0 = arith.constant 0 : index
    %c0_1 = arith.constant 0 : index
    %3 = vector.load %arg9[%c0, %c0_1] : memref<256x128xbf16, #tpu.memory_space<vmem>>, vector<256x128xbf16>
    %c0_2 = arith.constant 0 : index
    %c0_3 = arith.constant 0 : index
    %4 = vector.load %arg4[%c0_2, %c0_3] : memref<128x256xbf16, #tpu.memory_space<vmem>>, vector<128x256xbf16>
    %cst = arith.constant dense<0.000000e+00> : vector<256x256xf32>
    %5 = tpu.matmul %3, %4, %cst {dimension_numbers = #tpu.dot_dimension_numbers<[1], [0], [0], [1], [0, 0, 1, 1], [], []>} : vector<256x128xbf16>, vector<128x256xbf16>, vector<256x256xf32> -> vector<256x256xf32>
    %6 = vector.shape_cast %5 : vector<256x256xf32> to vector<2x128x256xf32>
    %cst_4 = arith.constant dense<0xFF800000> : vector<2x256xf32>
    %7 = vector.multi_reduction <maximumf>, %6, %cst_4 [1] : vector<2x128x256xf32> to vector<2x256xf32>
    %c0_5 = arith.constant 0 : index
    %c0_6 = arith.constant 0 : index
    %8 = vector.load %arg5[%c0_5, %c0_6] : memref<1x256xf32, #tpu.memory_space<vmem>>, vector<1x256xf32>
    %9 = vector.broadcast %8 : vector<1x256xf32> to vector<2x256xf32>
    %10 = arith.addf %7, %9 : vector<2x256xf32>
    %c0_7 = arith.constant 0 : index
    %c0_8 = arith.constant 0 : index
    %11 = vector.load %arg8[%c0_7, %c0_8] : memref<2x128xf32, #tpu.memory_space<vmem>>, vector<2x128xf32>
    %12 = arith.truncf %10 : vector<2x256xf32> to vector<2x256xbf16>
    %c0_9 = arith.constant 0 : index
    %c0_10 = arith.constant 0 : index
    %13 = vector.load %arg6[%c0_9, %c0_10] : memref<256x128xbf16, #tpu.memory_space<vmem>>, vector<256x128xbf16>
    %cst_11 = arith.constant dense<0.000000e+00> : vector<2x128xf32>
    %14 = tpu.matmul %12, %13, %cst_11 {dimension_numbers = #tpu.dot_dimension_numbers<[1], [0], [0], [1], [0, 0, 1, 1], [], []>} : vector<2x256xbf16>, vector<256x128xbf16>, vector<2x128xf32> -> vector<2x128xf32>
    %15 = arith.addf %11, %14 : vector<2x128xf32>
    %c0_12 = arith.constant 0 : index
    %c0_13 = arith.constant 0 : index
    %16 = vector.load %arg8[%c0_12, %c0_13] : memref<2x128xf32, #tpu.memory_space<vmem>>, vector<2x128xf32>
    tpu.vector_store %arg8[%c0_12, %c0_13], %15 {strides = array<i32>} : memref<2x128xf32, #tpu.memory_space<vmem>>, vector<2x128xf32>,
    return
  }
  func.func @transform_0(%arg0: i32) -> (i32, i32, i32) {
    %c0_i32 = arith.constant 0 : i32
    %c0_i32_0 = arith.constant 0 : i32
    %c0_i32_1 = arith.constant 0 : i32
    %c0_i32_2 = arith.constant 0 : i32
    return %c0_i32, %c0_i32_0, %c0_i32_1 : i32, i32, i32
  }
  func.func @transform_1(%arg0: i32) -> (i32, i32) {
    %c0_i32 = arith.constant 0 : i32
    %c0_i32_0 = arith.constant 0 : i32
    %c0_i32_1 = arith.constant 0 : i32
    return %c0_i32, %c0_i32_0 : i32, i32
  }
  func.func @transform_2(%arg0: i32) -> (i32, i32) {
    %c0_i32 = arith.constant 0 : i32
    %c0_i32_0 = arith.constant 0 : i32
    %c0_i32_1 = arith.constant 0 : i32
    return %c0_i32, %c0_i32_0 : i32, i32
  }
  func.func @transform_3(%arg0: i32) -> (i32, i32) {
    %c0_i32 = arith.constant 0 : i32
    %c0_i32_0 = arith.constant 0 : i32
    return %c0_i32, %arg0 : i32, i32
  }
  func.func @transform_4(%arg0: i32) -> (i32, i32) {
    %c0_i32 = arith.constant 0 : i32
    %c0_i32_0 = arith.constant 0 : i32
    return %c0_i32, %arg0 : i32, i32
  }
  func.func @transform_5(%arg0: i32) -> (i32, i32) {
    %c0_i32 = arith.constant 0 : i32
    %c0_i32_0 = arith.constant 0 : i32
    return %arg0, %c0_i32 : i32, i32
  }
  func.func @transform_6(%arg0: i32) -> (i32, i32) {
    %c0_i32 = arith.constant 0 : i32
    %c0_i32_0 = arith.constant 0 : i32
    %c0_i32_1 = arith.constant 0 : i32
    return %c0_i32, %c0_i32_0 : i32, i32
  }
  func.func @transform_7(%arg0: i32) -> (i32, i32) {
    %c0_i32 = arith.constant 0 : i32
    %c0_i32_0 = arith.constant 0 : i32
    %c0_i32_1 = arith.constant 0 : i32
    return %c0_i32, %c0_i32_0 : i32, i32
  }
}

</mosaic_0001>

<bundles_post_ra>
// kernel: tpu_custom_call.1
= control target key start
LH: loop header
LB: loop body
LE: loop exit
PB: predicated region body
PF: predicated region fallthrough
CT: control target
= control target key end

     0   :  { %12 = vsyncpa [#allocation4], 0  ;;  %s3738_s0 = inlined_call_operand.vmem [shape: f32[2,128,6], index: 0, kind: input, shape index: {}]   ;;  %s3739_s1 = inlined_call_operand.vmem [shape: bf16[8,128], index: 1, kind: input, shape index: {}]   ;;  %s3740_s2 = inlined_call_operand.vmem [shape: f32[1,128], index: 2, kind: input, shape index: {}]   ;;  %s3741_s3 = inlined_call_operand.hbm [shape: bf16[128,1024], index: 3, kind: input, shape index: {}]   ;;  %s3742_s4 = inlined_call_operand.vmem [shape: f32[1,1024], index: 4, kind: input, shape index: {}]   ;;  %s3743_s5 = inlined_call_operand.hbm [shape: bf16[1024,128], index: 5, kind: input, shape index: {}]   ;;  %s3744_s6 = inlined_call_operand.vmem [shape: f32[1,128], index: 6, kind: input, shape index: {}]   ;;  %s3745_s7 = inlined_call_operand.hbm [shape: f32[2,128], index: 7, kind: output, shape index: {}]  }
   0x1   :  { %14 = vsyncpa [#allocation4 + $0x1], 0 }
   0x2   :  { %15 = vsyncpa [#allocation7], 0 }
   0x3   :  { %17 = vsyncpa [#allocation7 + $0x1], 0 }
   0x4   :  { %18 = vsyncpa [#allocation5], 0  ;;  %s2593_s24 = smov 0   ;;  %s2595_s25 = smov 0  }
   0x5   :  { %s2597_s26 = smov 0   ;;  %s2599_s27 = smov 0  }
   0x6 LB: > { %s2612_s28 = sadd.s32 4294967295, %s2541_s27   ;;  %s2615_s29 = sadd.s32 1, %s2541_s27   ;;  %s2541_s27 = sphi %s2599_s27, %s3808_s27   ;;  %s2537_s26 = sphi %s2597_s26, %s3807_s26   ;;  %s2533_s25 = sphi %s2595_s25, %s3806_s25   ;;  %s2529_s24 = sphi %s2593_s24, %s3805_s24  }
   0x7   : > { %s91_s30 = ssub.s32 %s2541_s27, %s2615_s29  ;;  %s94_s8 = sadd.s32 1, %s2537_s26 }
   0x8   : > { %p92_p0 = scmp.eq.s32.totalorder %s91_s30, 0  ;;  %p101_p1 = scmp.ne.s32.totalorder %s2537_s26, %s2533_s25 }
   0x9   : > { %p102_p2 = scmp.eq.s32.totalorder %s2541_s27, 0  ;;  %p107_p3 = scmp.ne.s32.totalorder %s2533_s25, %s2529_s24 }
   0xa   : > { %s2625_s9 = scalar_select %p92_p0, %s2537_s26, %s94_s8  }
   0xb   : > { %p103_p4 = por %p102_p2, %p101_p1  ;;  %p108_p5 = scmp.eq.s32.totalorder %s2612_s28, 0 }
   0xc   : > { %p2258_p6 = scmp.lt.s32.totalorder %s2541_s27, 4  ;;  %s2634_s11 = sand.u32 1, %s2537_s26  }
   0xd   : > { %p2629_p7 = por %p108_p5, %p107_p3  ;;  %s2081_s12 = sshll.u32 %s2634_s11, 7 }
   0xe   : > { %s2148_s13 = sshll.u32 %s2541_s27, 7  ;;  %s241_s17 = scalar_lea.vmem [#allocation3], %s2081_s12 }
   0xf   : > { %s3767_s10 = scalar_select %p2629_p7, 1, 0 }
  0x10   : > { %s2641_s16 = scalar_lea.hbm %s3741_s3, %s2148_s13  ;;  %s248_s18 = sshll.u32 %s241_s17, 4  ;;  %s2645_s18 = int_to_ptr.vmem [resolvable:$true] %s248_s18 }
  0x11   : > { %p2647_p8 = pnand %p2258_p6, %p103_p4  ;;  %s238_s20 = scalar_lea.sflag [#allocation4], %s2634_s11 }
  0x12   : > { %s2413_s21 = scalar_lea.hbm %s2641_s16, 2048  ;;  %s2418_s24 = scalar_lea.hbm %s3741_s3, 8192 }
  0x13   : > { %p2414_p9 = scmp.ne.s32.totalorder %s2641_s16, %s2413_s21  ;;  %p2415_p10 = pneg %p2647_p8 }
  0x14   : > { %p2419_p13 = scmp.lt.u32.totalorder %s2641_s16, %s3741_s3  ;;  %p2420_p0 = scmp.lt.u32.totalorder %s2418_s24, %s2413_s21 }
  0x15   : > { %p2416_p11 = pnand %p2415_p10, %p2414_p9  ;;  %p2422_p2 = scmp.lt.u32.totalorder %s2413_s21, %s2641_s16 }
  0x16   : > { %p2421_p1 = por %p2420_p0, %p2419_p13 }
  0x17   : > { %p2417_p12 = pneg %p2416_p11 }
  0x18   : > { %p2423_p3 = por %p2422_p2, %p2421_p1 }
  0x1a   : > { %p2424_p4 = pnand %p2423_p3, %p2417_p12 }
  0x1c   : > { %2427 = shalt.err (!%p2424_p4)
}
  0x1d   : > { %s2428_s13 = scalar_lea.vmem %s2645_s18, 2048  ;;  %s2543_s14 = smov [#allocation3]  }
  0x1e   : > { %p2429_p5 = scmp.ne.s32.totalorder %s2645_s18, %s2428_s13  ;;  %s2433_s15 = sshll.u32 %s2543_s14, 4  ;;  %s2434_s15 = int_to_ptr.vmem [resolvable:$false] %s2433_s15 }
  0x1f   : > { %s2435_s17 = scalar_lea.vmem %s2434_s15, 4096  ;;  %p2436_p11 = scmp.lt.s32.totalorder %s2645_s18, %s2434_s15 }
  0x20   : > { %p2431_p6 = pnand %p2429_p5, %p2415_p10  ;;  %p2437_p13 = scmp.lt.s32.totalorder %s2435_s17, %s2428_s13 }
  0x22   : > { %p2432_p9 = pneg %p2431_p6  ;;  %p2438_p0 = por %p2437_p13, %p2436_p11 }
  0x24   : > { %p2439_p1 = pnand %p2438_p0, %p2432_p9 }
  0x26   : > { %2442 = shalt.err (!%p2439_p1)
}
  0x27   : > { %s2544_s21 = smov 512   ;;  %s2545_s22 = smov 128  }
  0x28   : > { %s2546_s23 = smov 8   ;;  %p2087_p12 = scmp.ge.s32.totalorder %s2541_s27, 1 }
  0x29   : > { %2254 = dma.hbm_to_vmem [thread:$0]  (!%p2647_p8), %s2641_s16, 2048, %s2645_s18, %s238_s20, %s2544_s21, %s2545_s22, %s2546_s23  }
  0x2a   : > { %p285_p2 = scmp.lt.s32.totalorder %s2541_s27, 5  ;;  %s2149_s30 = sshll.u32 %s2541_s27, 11 }
  0x2b   : > { %s2689_s14 = scalar_lea.hbm %s3743_s5, %s2149_s30  ;;  %s270_s15 = scalar_lea.vmem [#allocation6], %s2081_s12 }
  0x2c   : > { %p2681_p3 = pnand %p2087_p12, %p285_p2  ;;  %s277_s17 = sshll.u32 %s270_s15, 4  ;;  %s2693_s17 = int_to_ptr.vmem [resolvable:$true] %s277_s17 }
  0x2d   : > { %s267_s16 = scalar_lea.sflag [#allocation7], %s2634_s11  ;;  %s2443_s18 = scalar_lea.hbm %s2689_s14, 2048 }
  0x2e   : > { %p2444_p4 = scmp.ne.s32.totalorder %s2689_s14, %s2443_s18  ;;  %s2448_s21 = scalar_lea.hbm %s3743_s5, 8192 }
  0x2f   : > { %p2449_p9 = scmp.lt.u32.totalorder %s2689_s14, %s3743_s5  ;;  %p2450_p11 = scmp.lt.u32.totalorder %s2448_s21, %s2443_s18 }
  0x30   : > { %p2446_p5 = pnand %p2444_p4, %p2415_p10  ;;  %p2452_p0 = scmp.lt.u32.totalorder %s2443_s18, %s2689_s14 }
  0x31   : > { %p2451_p13 = por %p2450_p11, %p2449_p9 }
  0x32   : > { %p2447_p6 = pneg %p2446_p5 }
  0x33   : > { %p2453_p1 = por %p2452_p0, %p2451_p13 }
  0x35   : > { %p2454_p12 = pnand %p2453_p1, %p2447_p6 }
  0x37   : > { %2457 = shalt.err (!%p2454_p12)
}
  0x38   : > { %s2458_s12 = scalar_lea.vmem %s2693_s17, 2048  ;;  %s2547_s30 = smov [#allocation6]  }
  0x39   : > { %p2459_p2 = scmp.ne.s32.totalorder %s2693_s17, %s2458_s12  ;;  %s2463_s8 = sshll.u32 %s2547_s30, 4  ;;  %s2464_s8 = int_to_ptr.vmem [resolvable:$false] %s2463_s8 }
  0x3a   : > { %s2465_s13 = scalar_lea.vmem %s2464_s8, 4096  ;;  %p2466_p7 = scmp.lt.s32.totalorder %s2693_s17, %s2464_s8 }
  0x3b   : > { %p2461_p4 = pnand %p2459_p2, %p2415_p10  ;;  %p2467_p9 = scmp.lt.s32.totalorder %s2465_s13, %s2458_s12 }
  0x3d   : > { %p2462_p5 = pneg %p2461_p4  ;;  %p2468_p11 = por %p2467_p9, %p2466_p7 }
  0x3f   : > { %p2469_p13 = pnand %p2468_p11, %p2462_p5 }
  0x41   : > { %2472 = shalt.err (!%p2469_p13)
}
  0x42   : > { %s2548_s15 = smov 64   ;;  %s2549_s18 = smov 4  }
  0x43   : > { %2257 = dma.hbm_to_vmem [thread:$0]  (!%p2647_p8), %s2689_s14, 2048, %s2693_s17, %s267_s16, %s2548_s15, %s2548_s15, %s2549_s18  }
  0x44   : > { %289 = sbr.rel (%p2681_p3) target bundleno = 1310 (0x51e), region = 48  ;;  %s291_s27 = sand.u32 (!%p2681_p3), 1, %s2533_s25  }
  0x45   : > { %s2088_s20 = sshll.u32 (!%p2681_p3), %s291_s27, 7  ;;  %s292_s21 = scalar_lea.sflag (!%p2681_p3), [#allocation4], %s291_s27 }
  0x46   : > { %s2724_s22 = scalar_lea.vmem (!%p2681_p3), [#allocation3], %s2088_s20  ;;  %p3770_p7 = scmp.ne.s32.totalorder (!%p2681_p3), %s3767_s10, 0 }
  0x4b   : > { %2516 = dma.done.wait (%p3770_p7), %s292_s21, 2048  }
  0x4c   : > { %2518 = vsyncadd (%p3770_p7), %s292_s21, 4294965248  ;;  %s301_s23 = scalar_lea.sflag [#allocation7], %s291_s27  ;;  %s2730_s19 = scalar_lea.vmem [#allocation6], %s2088_s20 }
  0x4d   : > { %2520 = dma.done.wait (%p3770_p7), %s301_s23, 2048  }
  0x4e   : > { %2522 = vsyncadd (%p3770_p7), %s301_s23, 4294965248  ;;  %s2090_s11 = sshll.u32 %s2612_s28, 1  ;;  %p2091_p10 = scmp.ne.s32.totalorder %s2612_s28, 0 }
  0x4f   : > { %p341_p8 = scmp.lt.s32.totalorder %s2090_s11, 7 }
  0x50   : > { %350 = sbr.rel (%p2091_p10) target bundleno = 711 (0x2c7), region = 60 }
  0x51   : > { %s3810_s11 = smov (!%p341_p8, %s2090_s11), 7 }
  0x52   : > { %s343_s17 = scalar_lea.vmem %s3742_s4, %s3810_s11 }
  0x57   : > { %v2747_v0 = vld [vmem:[%s3738_s0] sm:$0xff]  ;;  %v2752_v1 = vld [vmem:[%s3738_s0 + $0x8] sm:$0xff]  ;;  %v2757_v2 = vld [vmem:[%s3738_s0 + $0x10] sm:$0xff]  ;;  %vm391_vm0 = vcmask 48128   ;;  %vm899_vm2 = vcmask 1043456   ;;  %vm850_vm8 = vcmask 64512  }
  0x58   : > { %3771 = vst [vmem:[#allocation12_spill] sm:$0xff] %v2757_v2  ;;  %v2762_v3 = vld [vmem:[%s3738_s0 + $0x18] sm:$0xff]  ;;  %v392_v4 = vsel %vm391_vm0, %v2747_v0, 0.0  ;;  %v393_v5 = vsel %vm391_vm0, %v2752_v1, 0.0  ;;  %v395_v6 = vsel %vm391_vm0, %v2757_v2, 0.0  ;;  %v2773_v7 = vld [vmem:[%s3738_s0 + $0x20] sm:$0xff] }
  0x59   : > { %v394_v8 = vadd.f32 %v393_v5, %v392_v4  ;;  %v397_v9 = vsel %vm391_vm0, %v2762_v3, 0.0  ;;  %v2780_v10 = vld [vmem:[%s3738_s0 + $0x28] sm:$0xff]  ;;  %v2785_v12 = vld [vmem:[%s3738_s0 + $0x30] sm:$0xff]  ;;  %v399_v13 = vsel %vm391_vm0, %v2773_v7, 0.0  ;;  %v2792_v14 = vld [vmem:[%s3738_s0 + $0x80] sm:$0xff] }
  0x5a   : > { %v2797_v16 = vld [vmem:[%s3738_s0 + $0x88] sm:$0xff]  ;;  %v2802_v17 = vld [vmem:[%s3738_s0 + $0x90] sm:$0xff]  ;;  %v2807_v18 = vld [vmem:[%s3738_s0 + $0x98] sm:$0xff]  ;;  %v401_v19 = vsel %vm391_vm0, %v2780_v10, 0.0  ;;  %v429_v20 = vsel %vm391_vm0, %v2792_v14, 0.0  ;;  %v403_v27 = vsel %vm391_vm0, %v2785_v12, 0.0 }
  0x5b   : > { %v396_v11 = vadd.f32 %v395_v6, %v394_v8  ;;  %v430_v21 = vsel %vm391_vm0, %v2797_v16, 0.0  ;;  %v432_v22 = vsel %vm391_vm0, %v2802_v17, 0.0  ;;  %v2820_v23 = vld [vmem:[%s3738_s0 + $0x38] sm:$0xff]  ;;  %v2825_v25 = vld [vmem:[%s3738_s0 + $0xa0] sm:$0xff]  ;;  %v434_v28 = vsel %vm391_vm0, %v2807_v18, 0.0  ;;  %v2839_v31 = vld [vmem:[%s3738_s0 + $0xa8] sm:$0xff] }
  0x5c   : > { %v431_v26 = vadd.f32 %v430_v21, %v429_v20  ;;  %v2834_v29 = vld [vmem:[%s3738_s0 + $0x40] sm:$0xff]  ;;  %v405_v33 = vsel %vm391_vm0, %v2820_v23, 0.0  ;;  %v436_v34 = vsel %vm391_vm0, %v2825_v25, 0.0  ;;  %v2848_v35 = vld [vmem:[%s3738_s0 + $0x48] sm:$0xff]  ;;  %v2853_v37 = vld [vmem:[%s3738_s0 + $0xb0] sm:$0xff]  ;;  %v438_v40 = vsel %vm391_vm0, %v2839_v31, 0.0 }
  0x5d   : > { %v398_v15 = vadd.f32 %v397_v9, %v396_v11  ;;  %3772 = vst [vmem:[#allocation13_spill] sm:$0xff] %v2853_v37  ;;  %v407_v39 = vsel %vm391_vm0, %v2834_v29, 0.0  ;;  %v2862_v41 = vld [vmem:[%s3738_s0 + $0x50] sm:$0xff]  ;;  %v2867_v43 = vld [vmem:[%s3738_s0 + $0xb8] sm:$0xff]  ;;  %v409_v45 = vsel %vm391_vm0, %v2848_v35, 0.0  ;;  %v440_v46 = vsel %vm391_vm0, %v2853_v37, 0.0 }
  0x5e   : > { %v433_v32 = vadd.f32 %v432_v22, %v431_v26  ;;  %3773 = vst [vmem:[#allocation14_spill] sm:$0xff] %v2867_v43  ;;  %v2876_v47 = vld [vmem:[%s3738_s0 + $0x58] sm:$0xff]  ;;  %v2881_v49 = vld [vmem:[%s3738_s0 + $0xc0] sm:$0xff]  ;;  %v411_v51 = vsel %vm391_vm0, %v2862_v41, 0.0  ;;  %v442_v52 = vsel %vm391_vm0, %v2867_v43, 0.0  ;;  %v2895_v55 = vld [vmem:[%s3738_s0 + $0xc8] sm:$0xff] }
  0x5f   : > { %v400_v24 = vadd.f32 %v399_v13, %v398_v15  ;;  %3774 = vst [vmem:[#allocation15_spill] sm:$0xff] %v2876_v47  ;;  %3775 = vst [vmem:[#allocation16_spill] sm:$0xff] %v2881_v49  ;;  %v2890_v53 = vld [vmem:[%s3738_s0 + $0x60] sm:$0xff]  ;;  %v413_v57 = vsel %vm391_vm0, %v2876_v47, 0.0  ;;  %v444_v58 = vsel %vm391_vm0, %v2881_v49, 0.0  ;;  %v2904_v59 = vld [vmem:[%s3738_s0 + $0x68] sm:$0xff] }
  0x60   : > { %v435_v38 = vadd.f32 %v434_v28, %v433_v32  ;;  %3776 = vst [vmem:[#allocation17_spill] sm:$0xff] %v2890_v53  ;;  %3777 = vst [vmem:[#allocation18_spill] sm:$0xff] %v2895_v55  ;;  %v2909_v61 = vld [vmem:[%s3738_s0 + $0xd0] sm:$0xff]  ;;  %v415_v63 = vsel %vm391_vm0, %v2890_v53, 0.0  ;;  %v446_v4 = vsel %vm391_vm0, %v2895_v55, 0.0  ;;  %v2923_v8 = vld [vmem:[%s3738_s0 + $0xd8] sm:$0xff] }
  0x61   : > { %v402_v30 = vadd.f32 %v401_v19, %v400_v24  ;;  %3778 = vst [vmem:[#allocation19_spill] sm:$0xff] %v2904_v59  ;;  %3779 = vst [vmem:[#allocation20_spill] sm:$0xff] %v2909_v61  ;;  %v2918_v5 = vld [vmem:[%s3738_s0 + $0x70] sm:$0xff]  ;;  %v417_v11 = vsel %vm391_vm0, %v2904_v59, 0.0  ;;  %v448_v13 = vsel %vm391_vm0, %v2909_v61, 0.0  ;;  %v2932_v15 = vld [vmem:[%s3738_s0 + $0x78] sm:$0xff] }
  0x62   : > { %v437_v44 = vadd.f32 %v436_v34, %v435_v38  ;;  %3780 = vst [vmem:[#allocation21_spill] sm:$0xff] %v2918_v5  ;;  %3781 = vst [vmem:[#allocation22_spill] sm:$0xff] %v2923_v8  ;;  %v2937_v20 = vld [vmem:[%s3738_s0 + $0xe0] sm:$0xff]  ;;  %v419_v22 = vsel %vm391_vm0, %v2918_v5, 0.0  ;;  %v450_v24 = vsel %vm391_vm0, %v2923_v8, 0.0  ;;  %v2955_v34 = vld [vmem:[%s3738_s0 + $0xf0] sm:$0xff] }
  0x63   : > { %v404_v36 = vadd.f32 %v403_v27, %v402_v30  ;;  %3782 = vst [vmem:[#allocation23_spill] sm:$0xff] %v2932_v15  ;;  %3783 = vst [vmem:[#allocation24_spill] sm:$0xff] %v2937_v20  ;;  %v2946_v27 = vld [vmem:[%s3738_s0 + $0xe8] sm:$0xff]  ;;  %v421_v30 = vsel %vm391_vm0, %v2932_v15, 0.0  ;;  %v452_v32 = vsel %vm391_vm0, %v2937_v20, 0.0 }
  0x64   : > { %v439_v50 = vadd.f32 %v438_v40, %v437_v44  ;;  %3784 = vst [vmem:[#allocation25_spill] sm:$0xff] %v2946_v27  ;;  %3785 = vst [vmem:[#allocation26_spill] sm:$0xff] %v2955_v34  ;;  %v454_v38 = vsel %vm391_vm0, %v2946_v27, 0.0  ;;  %v2962_v40 = vld [vmem:[%s3738_s0 + $0xf8] sm:$0xff]  ;;  %v456_v44 = vsel %vm391_vm0, %v2955_v34, 0.0 }
  0x65   : > { %v406_v42 = vadd.f32 %v405_v33, %v404_v36  ;;  %3786 = vst [vmem:[#allocation27_spill] sm:$0xff] %v2962_v40 }
  0x66   : > { %v441_v56 = vadd.f32 %v440_v46, %v439_v50  ;;  %v383_v50 = vlaneseq }
  0x67   : > { %v408_v48 = vadd.f32 %v407_v39, %v406_v42 }
  0x68   : > { %v443_v62 = vadd.f32 %v442_v52, %v441_v56 }
  0x69   : > { %v410_v54 = vadd.f32 %v409_v45, %v408_v48  ;;  %v458_v48 = vsel %vm391_vm0, %v2962_v40, 0.0 }
  0x6a   : > { %v445_v9 = vadd.f32 %v444_v58, %v443_v62 }
  0x6b   : > { %v412_v60 = vadd.f32 %v411_v51, %v410_v54 }
  0x6c   : > { %v447_v21 = vadd.f32 %v446_v4, %v445_v9 }
  0x6d   : > { %v414_v6 = vadd.f32 %v413_v57, %v412_v60  ;;  %v2968_v57 = vand.u32 127, %v383_v50 }
  0x6e   : > { %v449_v28 = vadd.f32 %v448_v13, %v447_v21  ;;  %v3747_v13 = vmov 0.0  }
  0x6f   : > { %v416_v19 = vadd.f32 %v415_v63, %v414_v6  ;;  %vm385_vm1 = vcmp.lt.s32.totalorder %v2968_v57, 3  ;;  %vm388_vm7 = vcmp.ge.s32.totalorder %v2968_v57, 3 }
  0x70   : > { %v451_v36 = vadd.f32 %v450_v24, %v449_v28 }
  0x71   : > { %v418_v26 = vadd.f32 %v417_v11, %v416_v19  ;;  %v2974_v19 = vsel %vm385_vm1, 1.0, %v3747_v13 }
  0x72   : > { %v453_v42 = vadd.f32 %v452_v32, %v451_v36 }
  0x73   : > { %v420_v33 = vadd.f32 %v419_v22, %v418_v26 }
  0x74   : > { %v455_v46 = vadd.f32 %v454_v38, %v453_v42 }
  0x75   : > { %v422_v39 = vadd.f32 %v421_v30, %v420_v33 }
  0x76   : > { %v457_v52 = vadd.f32 %v456_v44, %v455_v46 }
  0x77   : > { %v423_v45 = vrot.slane %v422_v39, 4 }
  0x78   : > { %v459_v56 = vadd.f32 %v458_v48, %v457_v52 }
  0x79   : > { %v424_v51 = vadd.f32 %v423_v45, %v422_v39 }
  0x7a   : > { %v460_v60 = vrot.slane %v459_v56, 4 }
  0x7b   : > { %v425_v54 = vrot.slane %v424_v51, 2 }
  0x7c   : > { %v461_v63 = vadd.f32 %v460_v60, %v459_v56 }
  0x7d   : > { %v426_v58 = vadd.f32 %v425_v54, %v424_v51 }
  0x7e   : > { %v462_v6 = vrot.slane %v461_v63, 2 }
  0x7f   : > { %v427_v62 = vrot.slane %v426_v58, 1 }
  0x80   : > { %v463_v11 = vadd.f32 %v462_v6, %v461_v63 }
  0x81   : > { %v428_v4 = vadd.f32 %v427_v62, %v426_v58 }
  0x82   : > { %v464_v30 = vrot.slane %v463_v11, 1 }
  0x83   : > { %v2971_v9 = vmul.f32 0.0078125, %v428_v4 }
  0x84   : > { %v465_v42 = vadd.f32 %v464_v30, %v463_v11 }
  0x85   : > { %v471_v21 = vsub.f32 %v2757_v2, %v2971_v9  ;;  %v2980_v22 = vmul.f32 %v2974_v19, %v2971_v9  ;;  %v469_v24 = vsub.f32 %v2747_v0, %v2971_v9  ;;  %v472_v26 = vsub.f32 %v2762_v3, %v2971_v9 }
  0x86   : > { %v470_v28 = vsub.f32 %v2752_v1, %v2971_v9  ;;  %v2994_v50 = vmul.f32 0.0078125, %v465_v42  ;;  %v474_v54 = vsub.f32 %v2780_v10, %v2971_v9  ;;  %v473_v6 = vsub.f32 %v2773_v7, %v2971_v9 }
  0x87   : > { %v503_v32 = vmul.f32 %v2974_v19, %v471_v21  ;;  %v501_v36 = vmul.f32 %v2974_v19, %v469_v24  ;;  %v504_v38 = vmul.f32 %v2974_v19, %v472_v26  ;;  %v734_v57 = vsub.f32 %v2773_v7, %v2980_v22 }
  0x88   : > { %v502_v39 = vmul.f32 %v2974_v19, %v470_v28  ;;  %v486_v56 = vsub.f32 %v2797_v16, %v2994_v50  ;;  %v485_v58 = vsub.f32 %v2792_v14, %v2994_v50  ;;  %v488_v60 = vsub.f32 %v2807_v18, %v2994_v50 }
  0x89   : > { %v535_v44 = vmul.f32 %v503_v32, %v503_v32  ;;  %v533_v45 = vmul.f32 %v501_v36, %v501_v36  ;;  %v536_v46 = vmul.f32 %v504_v38, %v504_v38  ;;  %v487_v4 = vsub.f32 %v2802_v17, %v2994_v50 }
  0x8a   : > { %v534_v48 = vmul.f32 %v502_v39, %v502_v39  ;;  %v518_v11 = vmul.f32 %v2974_v19, %v486_v56  ;;  %v517_v21 = vmul.f32 %v2974_v19, %v485_v58  ;;  %v520_v24 = vmul.f32 %v2974_v19, %v488_v60 }
  0x8b   : > { %v571_v51 = vsel %vm391_vm0, %v535_v44, 0.0  ;;  %v565_v52 = vsel %vm391_vm0, %v533_v45, 0.0  ;;  %v574_v62 = vsel %vm391_vm0, %v536_v46, 0.0  ;;  %v519_v26 = vmul.f32 %v2974_v19, %v487_v4 }
  0x8c   : > { %572 = vadd.xlane.f32.xlu1 %v571_v51  ;;  %566 = vadd.xlane.f32.xlu0 %v565_v52  ;;  %v568_v63 = vsel %vm391_vm0, %v534_v48, 0.0  ;;  %v506_v28 = vmul.f32 %v2974_v19, %v474_v54  ;;  %v550_v30 = vmul.f32 %v518_v11, %v518_v11  ;;  %v549_v32 = vmul.f32 %v517_v21, %v517_v21 }
  0x8d   : > { %v490_v36 = vsub.f32 %v2839_v31, %v2994_v50  ;;  %v552_v38 = vmul.f32 %v520_v24, %v520_v24  ;;  %v551_v39 = vmul.f32 %v519_v26, %v519_v26  ;;  %v505_v42 = vmul.f32 %v2974_v19, %v473_v6 }
  0x8e   : > { %v489_v44 = vsub.f32 %v2825_v25, %v2994_v50  ;;  %v616_v45 = vsel %vm391_vm0, %v550_v30, 0.0  ;;  %v613_v46 = vsel %vm391_vm0, %v549_v32, 0.0  ;;  %v476_v48 = vsub.f32 %v2820_v23, %v2971_v9 }
  0x8f   : > { %v538_v51 = vmul.f32 %v506_v28, %v506_v28  ;;  %v522_v52 = vmul.f32 %v2974_v19, %v490_v36  ;;  %v475_v54 = vsub.f32 %v2785_v12, %v2971_v9  ;;  %v622_v56 = vsel %vm391_vm0, %v552_v38, 0.0 }
  0x90   : > { %575 = vadd.xlane.f32.xlu1 %v574_v62  ;;  %569 = vadd.xlane.f32.xlu0 %v568_v63  ;;  %v619_v58 = vsel %vm391_vm0, %v551_v39, 0.0  ;;  %v537_v60 = vmul.f32 %v505_v42, %v505_v42  ;;  %v521_v62 = vmul.f32 %v2974_v19, %v489_v44  ;;  %v508_v6 = vmul.f32 %v2974_v19, %v476_v48 }
  0x91   : > { %v580_v63 = vsel %vm391_vm0, %v538_v51, 0.0  ;;  %v554_v4 = vmul.f32 %v522_v52, %v522_v52  ;;  %v507_v11 = vmul.f32 %v2974_v19, %v475_v54  ;;  %v492_v26 = vsub.f32 %v2867_v43, %v2994_v50 }
  0x92   : > { %v577_v21 = vsel %vm391_vm0, %v537_v60, 0.0  ;;  %v553_v24 = vmul.f32 %v521_v62, %v521_v62  ;;  %v491_v28 = vsub.f32 %v2853_v37, %v2994_v50  ;;  %v540_v32 = vmul.f32 %v508_v6, %v508_v6 }
  0x93   : > { %v628_v30 = vsel %vm391_vm0, %v554_v4, 0.0  ;;  %v539_v36 = vmul.f32 %v507_v11, %v507_v11  ;;  %v478_v38 = vsub.f32 %v2848_v35, %v2971_v9  ;;  %v524_v42 = vmul.f32 %v2974_v19, %v492_v26 }
  0x94   : > { %617 = vadd.xlane.f32.xlu1 %v616_v45  ;;  %614 = vadd.xlane.f32.xlu0 %v613_v46  ;;  %v625_v39 = vsel %vm391_vm0, %v553_v24, 0.0  ;;  %v523_v44 = vmul.f32 %v2974_v19, %v491_v28  ;;  %v477_v45 = vsub.f32 %v2834_v29, %v2971_v9  ;;  %v494_v46 = vsub.f32 %v2895_v55, %v2994_v50 }
  0x95   : > { %v586_v48 = vsel %vm391_vm0, %v540_v32, 0.0  ;;  %v510_v51 = vmul.f32 %v2974_v19, %v478_v38  ;;  %v493_v52 = vsub.f32 %v2881_v49, %v2994_v50  ;;  %v583_v54 = vsel %vm391_vm0, %v539_v36, 0.0 }
  0x96   : > { %v509_v60 = vmul.f32 %v2974_v19, %v477_v45  ;;  %v526_v62 = vmul.f32 %v2974_v19, %v494_v46  ;;  %v480_v6 = vsub.f32 %v2876_v47, %v2971_v9  ;;  %v479_v26 = vsub.f32 %v2862_v41, %v2971_v9 }
  0x97   : > { %v525_v4 = vmul.f32 %v2974_v19, %v493_v52 }
  0x98   : > { %623 = vadd.xlane.f32.xlu1 %v622_v56  ;;  %620 = vadd.xlane.f32.xlu0 %v619_v58  ;;  %v556_v56 = vmul.f32 %v524_v42, %v524_v42  ;;  %v555_v58 = vmul.f32 %v523_v44, %v523_v44  ;;  %v541_v24 = vmul.f32 %v509_v60, %v509_v60 }
  0x99   : > { %v557_v32 = vmul.f32 %v525_v4, %v525_v4  ;;  %v512_v36 = vmul.f32 %v2974_v19, %v480_v6  ;;  %v496_v42 = vsub.f32 %v2923_v8, %v2994_v50  ;;  %v495_v44 = vsub.f32 %v2909_v61, %v2994_v50 }
  0x9a   : > { %v634_v11 = vsel %vm391_vm0, %v556_v56, 0.0  ;;  %v589_v38 = vsel %vm391_vm0, %v541_v24, 0.0  ;;  %v498_v60 = vsub.f32 %v2946_v27, %v2994_v50  ;;  %v497_v4 = vsub.f32 %v2937_v20, %v2994_v50 }
  0x9b   : > { %v637_v46 = vsel %vm391_vm0, %v557_v32, 0.0  ;;  %v527_v56 = vmul.f32 %v2974_v19, %v495_v44  ;;  %v484_v32 = vsub.f32 %v2932_v15, %v2971_v9 }
  0x9c   : > { %581 = vadd.xlane.f32.xlu1 %v580_v63  ;;  %578 = vadd.xlane.f32.xlu0 %v577_v21  ;;  %v542_v63 = vmul.f32 %v510_v51, %v510_v51  ;;  %v631_v21 = vsel %vm391_vm0, %v555_v58, 0.0  ;;  %v482_v51 = vsub.f32 %v2904_v59, %v2971_v9  ;;  %v481_v58 = vsub.f32 %v2890_v53, %v2971_v9 }
  0x9e   : > { %v592_v28 = vsel %vm391_vm0, %v542_v63, 0.0  ;;  %v514_v63 = vmul.f32 %v2974_v19, %v482_v51  ;;  %v513_v24 = vmul.f32 %v2974_v19, %v481_v58 }
  0xa0   : > { %629 = vadd.xlane.f32.xlu1 %v628_v30  ;;  %626 = vadd.xlane.f32.xlu0 %v625_v39  ;;  %v558_v30 = vmul.f32 %v526_v62, %v526_v62  ;;  %v511_v39 = vmul.f32 %v2974_v19, %v479_v26  ;;  %v530_v26 = vmul.f32 %v2974_v19, %v498_v60 }
  0xa2   : > { %v640_v45 = vsel %vm391_vm0, %v558_v30, 0.0  ;;  %v543_v52 = vmul.f32 %v511_v39, %v511_v39  ;;  %v529_v30 = vmul.f32 %v2974_v19, %v497_v4  ;;  %v545_v39 = vmul.f32 %v513_v24, %v513_v24 }
  0xa4   : > { %587 = vadd.xlane.f32.xlu1 %v586_v48  ;;  %584 = vadd.xlane.f32.xlu0 %v583_v54  ;;  %v544_v48 = vmul.f32 %v512_v36, %v512_v36  ;;  %v528_v54 = vmul.f32 %v2974_v19, %v496_v42  ;;  %v595_v6 = vsel %vm391_vm0, %v543_v52, 0.0  ;;  %v483_v42 = vsub.f32 %v2918_v5, %v2971_v9 }
  0xa5   : > { %v601_v51 = vsel %vm391_vm0, %v545_v39, 0.0 }
  0xa6   : > { %v598_v62 = vsel %vm391_vm0, %v544_v48, 0.0  ;;  %v516_v48 = vmul.f32 %v2974_v19, %v484_v32  ;;  %v515_v52 = vmul.f32 %v2974_v19, %v483_v42 }
  0xa8   : > { %635 = vadd.xlane.f32.xlu1 %v634_v11  ;;  %632 = vadd.xlane.f32.xlu0 %v631_v21  ;;  %v560_v11 = vmul.f32 %v528_v54, %v528_v54  ;;  %v559_v21 = vmul.f32 %v527_v56, %v527_v56  ;;  %v500_v54 = vsub.f32 %v2962_v40, %v2994_v50 }
  0xa9   : > { %v499_v56 = vsub.f32 %v2955_v34, %v2994_v50  ;;  %v548_v58 = vmul.f32 %v516_v48, %v516_v48 }
  0xaa   : > { %v646_v36 = vsel %vm391_vm0, %v560_v11, 0.0 }
  0xab   : > { %v531_v4 = vmul.f32 %v2974_v19, %v499_v56 }
  0xac   : > { %593 = vadd.xlane.f32.xlu1 %v592_v28  ;;  %590 = vadd.xlane.f32.xlu0 %v589_v38  ;;  %v546_v28 = vmul.f32 %v514_v63, %v514_v63  ;;  %v643_v38 = vsel %vm391_vm0, %v559_v21, 0.0  ;;  %v532_v63 = vmul.f32 %v2974_v19, %v500_v54 }
  0xad   : > { %v563_v24 = vmul.f32 %v531_v4, %v531_v4 }
  0xae   : > { %v604_v44 = vsel %vm391_vm0, %v546_v28, 0.0  ;;  %v564_v21 = vmul.f32 %v532_v63, %v532_v63 }
  0xaf   : > { %v655_v28 = vsel %vm391_vm0, %v563_v24, 0.0 }
  0xb0   : > { %641 = vadd.xlane.f32.xlu1 %v640_v45  ;;  %638 = vadd.xlane.f32.xlu0 %v637_v46  ;;  %v562_v45 = vmul.f32 %v530_v26, %v530_v26  ;;  %v561_v46 = vmul.f32 %v529_v30, %v529_v30  ;;  %v658_v26 = vsel %vm391_vm0, %v564_v21, 0.0  ;;  %v842_v30 = vld [vmem:[%s3739_s1] sm:$0xf] }
  0xb1   : > { %2241 = vmatprep.subr.msk.bf16.mxu0 %vm899_vm2, %v842_v30  ;;  %v901_v32 = vsel %vm899_vm2, %v842_v30, 0  ;;  %2242 = vmatprep.subr.msk.bf16.mxu1 %vm899_vm2, %v842_v30 }
  0xb2   : > { %v652_v9 = vsel %vm391_vm0, %v562_v45, 0.0  ;;  %v649_v60 = vsel %vm391_vm0, %v561_v46, 0.0  ;;  %2190 = vmatpush3.bf16.msra.mxu0 %v901_v32  ;;  %2224 = vmatpush3.bf16.msra.mxu1 %v901_v32 }
  0xb4   : > { %599 = vadd.xlane.f32.xlu1 %v598_v62  ;;  %596 = vadd.xlane.f32.xlu0 %v595_v6  ;;  %v547_v62 = vmul.f32 %v515_v52, %v515_v52  ;;  %v610_v6 = vsel %vm391_vm0, %v548_v58, 0.0 }
  0xb6   : > { %v607_v11 = vsel %vm391_vm0, %v547_v62, 0.0 }
  0xb8   : > { %647 = vadd.xlane.f32.xlu1 %v646_v36  ;;  %644 = vadd.xlane.f32.xlu0 %v643_v38 }
  0xbc   : > { %605 = vadd.xlane.f32.xlu1 %v604_v44  ;;  %602 = vadd.xlane.f32.xlu0 %v601_v51 }
  0xc0   : > { %653 = vadd.xlane.f32.xlu1 %v652_v9  ;;  %650 = vadd.xlane.f32.xlu0 %v649_v60 }
  0xc4   : > { %611 = vadd.xlane.f32.xlu1 %v610_v6  ;;  %608 = vadd.xlane.f32.xlu0 %v607_v11 }
  0xc8   : > { %659 = vadd.xlane.f32.xlu1 %v658_v26  ;;  %656 = vadd.xlane.f32.xlu0 %v655_v28 }
 0x119   : > { %v573_v36 = vpop.xlane.xlu1 %572  ;;  %v567_v38 = vpop.xlane.xlu0 %566 }
 0x11a   : > { %v661_v30 = vmax.f32 %v567_v38, %v573_v36 }
 0x11d   : > { %v576_v39 = vpop.xlane.xlu1 %575  ;;  %v570_v42 = vpop.xlane.xlu0 %569 }
 0x11e   : > { %v662_v32 = vmax.f32 %v570_v42, %v576_v39 }
 0x121   : > { %v618_v44 = vpop.xlane.xlu1 %617  ;;  %v615_v45 = vpop.xlane.xlu0 %614 }
 0x125   : > { %v624_v46 = vpop.xlane.xlu1 %623  ;;  %v621_v48 = vpop.xlane.xlu0 %620 }
 0x126   : > { %v683_v15 = vmax.f32 %v618_v44, %v624_v46  ;;  %v682_v5 = vmax.f32 %v615_v45, %v621_v48 }
 0x129   : > { %v582_v51 = vpop.xlane.xlu1 %581  ;;  %v579_v52 = vpop.xlane.xlu0 %578 }
 0x12a   : > { %v664_v33 = vmax.f32 %v662_v32, %v582_v51  ;;  %v663_v13 = vmax.f32 %v661_v30, %v579_v52  ;;  %v3787_v30 = vmov 0.0  }
 0x12b   : > { %v2093_v32 = vsel %vm388_vm7, 1.0, %v3787_v30 }
 0x12d   : > { %v630_v54 = vpop.xlane.xlu1 %629  ;;  %v627_v56 = vpop.xlane.xlu0 %626 }
 0x12e   : > { %v685_v8 = vmax.f32 %v683_v15, %v630_v54  ;;  %v684_v61 = vmax.f32 %v682_v5, %v627_v56 }
 0x131   : > { %v588_v9 = vpop.xlane.xlu1 %587  ;;  %v585_v58 = vpop.xlane.xlu0 %584 }
 0x132   : > { %v666_v27 = vmax.f32 %v664_v33, %v588_v9  ;;  %v665_v20 = vmax.f32 %v663_v13, %v585_v58 }
 0x135   : > { %v636_v60 = vpop.xlane.xlu1 %635  ;;  %v633_v62 = vpop.xlane.xlu0 %632 }
 0x136   : > { %v687_v43 = vmax.f32 %v685_v8, %v636_v60  ;;  %v686_v37 = vmax.f32 %v684_v61, %v633_v62 }
 0x139   : > { %v594_v63 = vpop.xlane.xlu1 %593  ;;  %v591_v4 = vpop.xlane.xlu0 %590 }
 0x13a   : > { %v668_v55 = vmax.f32 %v666_v27, %v594_v63  ;;  %v667_v2 = vmax.f32 %v665_v20, %v591_v4 }
 0x13d   : > { %v642_v6 = vpop.xlane.xlu1 %641  ;;  %v639_v11 = vpop.xlane.xlu0 %638 }
 0x13e   : > { %v689_v36 = vmax.f32 %v687_v43, %v642_v6  ;;  %v688_v38 = vmax.f32 %v686_v37, %v639_v11 }
 0x141   : > { %v600_v21 = vpop.xlane.xlu1 %599  ;;  %v597_v24 = vpop.xlane.xlu0 %596 }
 0x142   : > { %v670_v53 = vmax.f32 %v668_v55, %v600_v21  ;;  %v669_v47 = vmax.f32 %v667_v2, %v597_v24 }
 0x145   : > { %v648_v26 = vpop.xlane.xlu1 %647  ;;  %v645_v28 = vpop.xlane.xlu0 %644 }
 0x146   : > { %v691_v44 = vmax.f32 %v689_v36, %v648_v26  ;;  %v690_v45 = vmax.f32 %v688_v38, %v645_v28  ;;  %v3119_v36 = vmul.f32 %v2974_v19, %v2994_v50  ;;  %v725_v38 = vmul.f32 0.003921569, %v2093_v32 }
 0x147   : > { %v736_v50 = vsub.f32 %v2785_v12, %v2980_v22 }
 0x148   : > { %v746_v7 = vsub.f32 %v2792_v14, %v3119_v36  ;;  %v748_v12 = vsub.f32 %v2802_v17, %v3119_v36  ;;  %v740_v14 = vsub.f32 %v2862_v41, %v2980_v22 }
 0x149   : > { %v606_v40 = vpop.xlane.xlu1 %605  ;;  %v603_v34 = vpop.xlane.xlu0 %602 }
 0x14a   : > { %v672_v39 = vmax.f32 %v670_v53, %v606_v40  ;;  %v671_v42 = vmax.f32 %v669_v47, %v603_v34 }
 0x14d   : > { %v654_v59 = vpop.xlane.xlu1 %653  ;;  %v651_v49 = vpop.xlane.xlu0 %650 }
 0x14e   : > { %v693_v15 = vmax.f32 %v691_v44, %v654_v59  ;;  %v692_v5 = vmax.f32 %v690_v45, %v651_v49  ;;  %v737_v45 = vsub.f32 %v2820_v23, %v2980_v22  ;;  %v749_v23 = vsub.f32 %v2807_v18, %v3119_v36 }
 0x151   : > { %v612_v51 = vpop.xlane.xlu1 %611  ;;  %v609_v52 = vpop.xlane.xlu0 %608 }
 0x152   : > { %v674_v33 = vmax.f32 %v672_v39, %v612_v51  ;;  %v673_v13 = vmax.f32 %v671_v42, %v609_v52  ;;  %v730_v39 = vsub.f32 %v2747_v0, %v2980_v22  ;;  %v731_v42 = vsub.f32 %v2752_v1, %v2980_v22 }
 0x153   : > { %v733_v51 = vsub.f32 %v2762_v3, %v2980_v22  ;;  %v735_v52 = vsub.f32 %v2780_v10, %v2980_v22  ;;  %v738_v0 = vsub.f32 %v2834_v29, %v2980_v22  ;;  %v739_v1 = vsub.f32 %v2848_v35, %v2980_v22 }
 0x154   : > { %v675_v27 = vmax.f32 %v673_v13, %v674_v33  ;;  %v747_v10 = vsub.f32 %v2797_v16, %v3119_v36  ;;  %v750_v29 = vsub.f32 %v2825_v25, %v3119_v36  ;;  %v751_v35 = vsub.f32 %v2839_v31, %v3119_v36  ;;  %v3788_v13 = vld [vmem:[#allocation15_spill] sm:$0xff] }
 0x155   : > { %v660_v20 = vpop.xlane.xlu1 %659  ;;  %v657_v46 = vpop.xlane.xlu0 %656  ;;  %v741_v16 = vsub.f32 %v3788_v13, %v2980_v22  ;;  %v3799_v13 = vld [vmem:[#allocation24_spill] sm:$0xff] }
 0x156   : > { %v676_v48 = vrot.slane %v675_v27, 4  ;;  %v695_v8 = vmax.f32 %v693_v15, %v660_v20  ;;  %v694_v61 = vmax.f32 %v692_v5, %v657_v46  ;;  %v3789_v15 = vld [vmem:[#allocation17_spill] sm:$0xff]  ;;  %v3792_v20 = vld [vmem:[#allocation16_spill] sm:$0xff]  ;;  %v3793_v46 = vld [vmem:[#allocation19_spill] sm:$0xff] }
 0x157   : > { %v742_v17 = vsub.f32 %v3789_v15, %v2980_v22  ;;  %v3790_v5 = vld [vmem:[#allocation13_spill] sm:$0xff]  ;;  %v754_v31 = vsub.f32 %v3792_v20, %v3119_v36 }
 0x158   : > { %v677_v55 = vmax.f32 %v675_v27, %v676_v48  ;;  %v696_v2 = vmax.f32 %v694_v61, %v695_v8  ;;  %v752_v18 = vsub.f32 %v3790_v5, %v3119_v36  ;;  %v3791_v27 = vld [vmem:[#allocation14_spill] sm:$0xff]  ;;  %v743_v48 = vsub.f32 %v3793_v46, %v2980_v22  ;;  %v3800_v15 = vld [vmem:[#allocation25_spill] sm:$0xff] }
 0x159   : > { %v753_v25 = vsub.f32 %v3791_v27, %v3119_v36 }
 0x15a   : > { %v678_v43 = vrot.slane %v677_v55, 2  ;;  %v697_v37 = vrot.slane %v696_v2, 4 }
 0x15c   : > { %v679_v53 = vmax.f32 %v677_v55, %v678_v43  ;;  %v698_v47 = vmax.f32 %v696_v2, %v697_v37  ;;  %v3794_v55 = vld [vmem:[#allocation12_spill] sm:$0xff] }
 0x15d   : > { %v3795_v2 = vsub.f32 %v3794_v55, %v2980_v22 }
 0x15e   : > { %v680_v34 = vrot.slane %v679_v53, 1  ;;  %v699_v40 = vrot.slane %v698_v47, 2 }
 0x160   : > { %v681_v54 = vmax.f32 %v679_v53, %v680_v34  ;;  %v700_v56 = vmax.f32 %v698_v47, %v699_v40 }
 0x162   : > { %2301 = vrsqrt.f32 %v681_v54  ;;  %v701_v9 = vrot.slane %v700_v56, 1  ;;  %vm705_vm3 = vcmp.eq.f32.partialorder %v681_v54, inf  ;;  %v708_v60 = vand.u32 2147483648, %v681_v54 }
 0x163   : > { %vm707_vm4 = vcmp.eq.f32.partialorder %v681_v54, 0.0 }
 0x164   : > { %v702_v59 = vmax.f32 %v700_v56, %v701_v9 }
 0x166   : > { %2303 = vrsqrt.f32 %v702_v59  ;;  %vm712_vm5 = vcmp.eq.f32.partialorder %v702_v59, inf  ;;  %v715_v21 = vand.u32 2147483648, %v702_v59  ;;  %vm714_vm6 = vcmp.eq.f32.partialorder %v702_v59, 0.0 }
 0x16c   : > { %v2302_v49 = vpop.eup %2301 }
 0x16d   : > { %v704_v58 = vmul.f32 %v2302_v49, %v681_v54 }
 0x16f   : > { %v706_v62 = vsel %vm705_vm3, %v681_v54, %v704_v58 }
 0x170   : > { %v709_v63 = vsel %vm707_vm4, %v708_v60, %v706_v62  ;;  %v2304_v4 = vpop.eup %2303 }
 0x171   : > { %v717_v6 = vadd.f32 1e-06, %v709_v63  ;;  %v711_v11 = vmul.f32 %v2304_v4, %v702_v59 }
 0x173   : > { %2305 = vrcp.f32 %v717_v6  ;;  %v713_v24 = vsel %vm712_vm5, %v702_v59, %v711_v11  ;;  %v3796_v6 = vld [vmem:[#allocation18_spill] sm:$0xff] }
 0x174   : > { %v716_v26 = vsel %vm714_vm6, %v715_v21, %v713_v24  ;;  %v755_v11 = vsub.f32 %v3796_v6, %v3119_v36 }
 0x175   : > { %v718_v28 = vadd.f32 1e-06, %v716_v26 }
 0x177   : > { %2307 = vrcp.f32 %v718_v28 }
 0x17d   : > { %v2306_v44 = vpop.eup %2305 }
 0x17e   : > { %v723_v3 = vmul.f32 %v2306_v44, %v2974_v19 }
 0x180   : > { %v3152_v33 = vadd.f32 %v725_v38, %v723_v3 }
 0x181   : > { %v2308_v8 = vpop.eup %2307 }
 0x182   : > { %v762_v41 = vmul.f32 %v730_v39, %v3152_v33  ;;  %v763_v61 = vmul.f32 %v731_v42, %v3152_v33  ;;  %v764_v43 = vmul.f32 %v3795_v2, %v3152_v33  ;;  %v765_v37 = vmul.f32 %v733_v51, %v3152_v33 }
 0x183   : > { %v724_v53 = vmul.f32 %v2308_v8, %v2974_v19  ;;  %v766_v47 = vmul.f32 %v734_v57, %v3152_v33  ;;  %v767_v34 = vmul.f32 %v735_v52, %v3152_v33  ;;  %v768_v40 = vmul.f32 %v736_v50, %v3152_v33  ;;  %v3797_v8 = vld [vmem:[#allocation20_spill] sm:$0xff] }
 0x184   : > { %v794_v54 = vsel %vm391_vm0, %v762_v41, 0.0  ;;  %v795_v56 = vsel %vm391_vm0, %v763_v61, 0.0  ;;  %v796_v9 = vsel %vm391_vm0, %v764_v43, 0.0  ;;  %v797_v59 = vsel %vm391_vm0, %v765_v37, 0.0 }
 0x185   : > { %v3183_v49 = vadd.f32 %v725_v38, %v724_v53  ;;  %v826_v58 = vpack.c.bf16 %v795_v56, %v794_v54  ;;  %v827_v60 = vpack.c.bf16 %v797_v59, %v796_v9  ;;  %v798_v19 = vsel %vm391_vm0, %v766_v47, 0.0  ;;  %v3801_v47 = vld [vmem:[#allocation21_spill] sm:$0xff] }
 0x186   : > { %v799_v62 = vsel %vm391_vm0, %v767_v34, 0.0  ;;  %v769_v63 = vmul.f32 %v737_v45, %v3152_v33  ;;  %v770_v4 = vmul.f32 %v738_v0, %v3152_v33  ;;  %v800_v39 = vsel %vm391_vm0, %v768_v40, 0.0  ;;  %v3802_v40 = vld [vmem:[#allocation23_spill] sm:$0xff] }
 0x187   : > { %2191 = vmatprep.mubr.msk.bf16.mxu0 %vm850_vm8, %v826_v58  ;;  %v828_v21 = vpack.c.bf16 %v799_v62, %v798_v19  ;;  %v778_v24 = vmul.f32 %v746_v7, %v3183_v49  ;;  %v779_v26 = vmul.f32 %v747_v10, %v3183_v49  ;;  %v780_v28 = vmul.f32 %v748_v12, %v3183_v49 }
 0x188   : > { %2192 = vmatmul.mubr.msk.bf16.vlgmr.msra.gmra.mrb[0].mxu0 %vm850_vm8, %v827_v60  ;;  %v781_v30 = vmul.f32 %v749_v23, %v3183_v49  ;;  %v782_v32 = vmul.f32 %v750_v29, %v3183_v49  ;;  %v783_v38 = vmul.f32 %v751_v35, %v3183_v49  ;;  %v801_v52 = vsel %vm391_vm0, %v769_v63, 0.0 }
 0x189   : > { %2195 = vmatprep.mubr.msk.bf16.mxu0 %vm850_vm8, %v828_v21  ;;  %v810_v42 = vsel %vm391_vm0, %v778_v24, 0.0  ;;  %v811_v51 = vsel %vm391_vm0, %v779_v26, 0.0  ;;  %v812_v57 = vsel %vm391_vm0, %v780_v28, 0.0  ;;  %v771_v10 = vmul.f32 %v739_v1, %v3152_v33  ;;  %v3803_v26 = vld [vmem:[#allocation26_spill] sm:$0xff] }
 0x18a   : > { %v834_v44 = vpack.c.bf16 %v811_v51, %v810_v42  ;;  %v813_v50 = vsel %vm391_vm0, %v781_v30, 0.0  ;;  %v814_v45 = vsel %vm391_vm0, %v782_v32, 0.0  ;;  %v815_v0 = vsel %vm391_vm0, %v783_v38, 0.0  ;;  %v3804_v30 = vld [vmem:[#allocation27_spill] sm:$0xff] }
 0x18b   : > { %v835_v3 = vpack.c.bf16 %v813_v50, %v812_v57  ;;  %v836_v7 = vpack.c.bf16 %v815_v0, %v814_v45  ;;  %v802_v12 = vsel %vm391_vm0, %v770_v4, 0.0  ;;  %v784_v23 = vmul.f32 %v752_v18, %v3183_v49  ;;  %v3798_v18 = vld [vmem:[#allocation22_spill] sm:$0xff] }
 0x18c   : > { %2207 = vmatprep.mubr.msk.bf16.mxu1 %vm850_vm8, %v834_v44  ;;  %v785_v29 = vmul.f32 %v753_v25, %v3183_v49  ;;  %v786_v35 = vmul.f32 %v754_v31, %v3183_v49  ;;  %v787_v5 = vmul.f32 %v755_v11, %v3183_v49  ;;  %v803_v27 = vsel %vm391_vm0, %v771_v10, 0.0 }
 0x18d   : > { %2208 = vmatmul.mubr.msk.bf16.vlgmr.msra.gmra.mrb[0].mxu1 %vm850_vm8, %v835_v3  ;;  %v829_v20 = vpack.c.bf16 %v801_v52, %v800_v39  ;;  %v772_v1 = vmul.f32 %v740_v14, %v3152_v33  ;;  %v756_v41 = vsub.f32 %v3797_v8, %v3119_v36  ;;  %v757_v61 = vsub.f32 %v3798_v18, %v3119_v36  ;;  %v2111_v3 = vld [vmem:[%s3744_s6] ss:$0 sm:$0xff] }
 0x18e   : > { %2211 = vmatprep.mubr.msk.bf16.mxu1 %vm850_vm8, %v836_v7  ;;  %v830_v25 = vpack.c.bf16 %v803_v27, %v802_v12  ;;  %v816_v31 = vsel %vm391_vm0, %v784_v23, 0.0  ;;  %v773_v55 = vmul.f32 %v741_v16, %v3152_v33  ;;  %v774_v2 = vmul.f32 %v742_v17, %v3152_v33  ;;  %1391 = vst [vmem:[#allocation8] sm:$0x3] %v2111_v3 }
 0x18f   : > { %v817_v14 = vsel %vm391_vm0, %v785_v29, 0.0  ;;  %v818_v43 = vsel %vm391_vm0, %v786_v35, 0.0  ;;  %v819_v37 = vsel %vm391_vm0, %v787_v5, 0.0  ;;  %v775_v53 = vmul.f32 %v743_v48, %v3152_v33 }
 0x190   : > { %2196 = vmatmul.mubr.msk.bf16.gmra.mrb[4].mxu0 %vm850_vm8, %v829_v20  ;;  %v758_v16 = vsub.f32 %v3799_v13, %v3119_v36  ;;  %v759_v17 = vsub.f32 %v3800_v15, %v3119_v36  ;;  %v744_v34 = vsub.f32 %v3801_v47, %v2980_v22  ;;  %v745_v54 = vsub.f32 %v3802_v40, %v2980_v22 }
 0x191   : > { %2199 = vmatprep.mubr.msk.bf16.mxu0 %vm850_vm8, %v830_v25  ;;  %v837_v56 = vpack.c.bf16 %v817_v14, %v816_v31  ;;  %v838_v9 = vpack.c.bf16 %v819_v37, %v818_v43  ;;  %v804_v59 = vsel %vm391_vm0, %v772_v1, 0.0  ;;  %v805_v46 = vsel %vm391_vm0, %v773_v55, 0.0 }
 0x192   : > { %v806_v48 = vsel %vm391_vm0, %v774_v2, 0.0  ;;  %v807_v58 = vsel %vm391_vm0, %v775_v53, 0.0  ;;  %v788_v60 = vmul.f32 %v756_v41, %v3183_v49  ;;  %v789_v19 = vmul.f32 %v757_v61, %v3183_v49 }
 0x193   : > { %v790_v62 = vmul.f32 %v758_v16, %v3183_v49  ;;  %v791_v22 = vmul.f32 %v759_v17, %v3183_v49  ;;  %v831_v63 = vpack.c.bf16 %v805_v46, %v804_v59  ;;  %v832_v4 = vpack.c.bf16 %v807_v58, %v806_v48 }
 0x194   : > { %v776_v6 = vmul.f32 %v744_v34, %v3152_v33  ;;  %v777_v11 = vmul.f32 %v745_v54, %v3152_v33  ;;  %v820_v21 = vsel %vm391_vm0, %v788_v60, 0.0  ;;  %v821_v24 = vsel %vm391_vm0, %v789_v19, 0.0 }
 0x195   : > { %2212 = vmatmul.mubr.msk.bf16.gmra.mrb[4].mxu1 %vm850_vm8, %v837_v56  ;;  %v760_v28 = vsub.f32 %v3803_v26, %v3119_v36  ;;  %v761_v32 = vsub.f32 %v3804_v30, %v3119_v36  ;;  %v822_v38 = vsel %vm391_vm0, %v790_v62, 0.0  ;;  %v823_v39 = vsel %vm391_vm0, %v791_v22, 0.0 }
 0x196   : > { %2215 = vmatprep.mubr.msk.bf16.mxu1 %vm850_vm8, %v838_v9  ;;  %v839_v42 = vpack.c.bf16 %v821_v24, %v820_v21  ;;  %v808_v33 = vsel %vm391_vm0, %v776_v6, 0.0  ;;  %v809_v51 = vsel %vm391_vm0, %v777_v11, 0.0  ;;  %v840_v57 = vpack.c.bf16 %v823_v39, %v822_v38 }
 0x197   : > { %v792_v52 = vmul.f32 %v760_v28, %v3183_v49  ;;  %v793_v44 = vmul.f32 %v761_v32, %v3183_v49  ;;  %v833_v36 = vpack.c.bf16 %v809_v51, %v808_v33  ;;  %v3287_v49 = vld [vmem:[%s3740_s2] ss:$0 sm:$0xff] }
 0x198   : > { %2200 = vmatmul.mubr.msk.bf16.gmra.mrb[8].mxu0 %vm850_vm8, %v831_v63 }
 0x199   : > { %2203 = vmatprep.mubr.msk.bf16.mxu0 %vm850_vm8, %v832_v4  ;;  %v824_v50 = vsel %vm391_vm0, %v792_v52, 0.0  ;;  %v825_v45 = vsel %vm391_vm0, %v793_v44, 0.0 }
 0x19a   : > { %v841_v0 = vpack.c.bf16 %v825_v45, %v824_v50 }
 0x19d   : > { %2216 = vmatmul.mubr.msk.bf16.gmra.mrb[8].mxu1 %vm850_vm8, %v839_v42 }
 0x19e   : > { %2219 = vmatprep.mubr.msk.bf16.mxu1 %vm850_vm8, %v840_v57 }
 0x1a0   : > { %2204 = vmatmul.mubr.msk.bf16.gmra.mrb[12].mxu0 %vm850_vm8, %v833_v36 }
 0x1a5   : > { %2220 = vmatmul.mubr.msk.bf16.gmra.mrb[12].mxu1 %vm850_vm8, %v841_v0 }
 0x25b   : > { %v2193_v7 = vpop.f32.mrb[0].mxu0 }
 0x25c   : > { %v3290_v10 = vadd.f32 %v2193_v7, %v3287_v49  ;;  %v937_v12 = vpop.f32.mrb[1].mxu0 }
 0x25d   : > { %v3293_v23 = vadd.f32 %v3287_v49, %v937_v12  ;;  %v2194_v29 = vpop.f32.mrb[2].mxu0 }
 0x25e   : > { %v1066_v35 = vmul.f32 %v3290_v10, %v3290_v10  ;;  %v3298_v5 = vadd.f32 %v2194_v29, %v3287_v49  ;;  %v940_v27 = vpop.f32.mrb[3].mxu0 }
 0x25f   : > { %v1064_v20 = vmul.f32 %v3293_v23, %v3293_v23  ;;  %v3303_v1 = vadd.f32 %v3287_v49, %v940_v27 }
 0x260   : > { %v1098_v8 = vmul.f32 %v1066_v35, %v3290_v10  ;;  %v1067_v41 = vmul.f32 %v3298_v5, %v3298_v5  ;;  %v2209_v18 = vpop.f32.mrb[0].mxu1 }
 0x261   : > { %v1096_v61 = vmul.f32 %v1064_v20, %v3293_v23  ;;  %v1065_v25 = vmul.f32 %v3303_v1, %v3303_v1  ;;  %v3312_v31 = vadd.f32 %v2209_v18, %v3287_v49  ;;  %v1001_v55 = vpop.f32.mrb[1].mxu1 }
 0x262   : > { %v1130_v2 = vmul.f32 0.044715, %v1098_v8  ;;  %v1099_v14 = vmul.f32 %v1067_v41, %v3298_v5  ;;  %v3316_v43 = vadd.f32 %v3287_v49, %v1001_v55  ;;  %v2210_v37 = vpop.f32.mrb[2].mxu1 }
 0x263   : > { %v1128_v53 = vmul.f32 0.044715, %v1096_v61  ;;  %v1097_v13 = vmul.f32 %v1065_v25, %v3303_v1  ;;  %v1082_v16 = vmul.f32 %v3312_v31, %v3312_v31  ;;  %v3322_v15 = vadd.f32 %v2210_v37, %v3287_v49  ;;  %v1004_v17 = vpop.f32.mrb[3].mxu1  ;;  %v2197_v47 = vpop.f32.mrb[4].mxu0 }
 0x264   : > { %v1162_v34 = vadd.f32 %v1130_v2, %v3290_v10  ;;  %v1131_v40 = vmul.f32 0.044715, %v1099_v14  ;;  %v1080_v54 = vmul.f32 %v3316_v43, %v3316_v43  ;;  %v3328_v56 = vadd.f32 %v3287_v49, %v1004_v17  ;;  %v953_v9 = vpop.f32.mrb[5].mxu0 }
 0x265   : > { %v1160_v59 = vadd.f32 %v1128_v53, %v3293_v23  ;;  %v1129_v46 = vmul.f32 0.044715, %v1097_v13  ;;  %v1114_v48 = vmul.f32 %v1082_v16, %v3312_v31  ;;  %v1083_v58 = vmul.f32 %v3322_v15, %v3322_v15  ;;  %v2198_v60 = vpop.f32.mrb[6].mxu0 }
 0x266   : > { %v1194_v19 = vmul.f32 0.7978846, %v1162_v34  ;;  %v1163_v62 = vadd.f32 %v1131_v40, %v3298_v5  ;;  %v1112_v22 = vmul.f32 %v1080_v54, %v3316_v43  ;;  %v1081_v63 = vmul.f32 %v3328_v56, %v3328_v56  ;;  %v956_v4 = vpop.f32.mrb[7].mxu0 }
 0x267   : > { %v1192_v6 = vmul.f32 0.7978846, %v1160_v59  ;;  %v1161_v11 = vadd.f32 %v1129_v46, %v3303_v1  ;;  %v1146_v21 = vmul.f32 0.044715, %v1114_v48  ;;  %v1115_v24 = vmul.f32 %v1083_v58, %v3322_v15 }
 0x268   : > { %2309 = vtanh.f32 %v1194_v19  ;;  %v1195_v26 = vmul.f32 0.7978846, %v1163_v62  ;;  %v1144_v28 = vmul.f32 0.044715, %v1112_v22  ;;  %v1113_v30 = vmul.f32 %v1081_v63, %v3328_v56  ;;  %v2213_v32 = vpop.f32.mrb[4].mxu1 }
 0x269   : > { %2311 = vtanh.f32 %v1192_v6  ;;  %v1193_v38 = vmul.f32 0.7978846, %v1161_v11  ;;  %v1178_v39 = vadd.f32 %v1146_v21, %v3312_v31  ;;  %v1147_v42 = vmul.f32 0.044715, %v1115_v24  ;;  %v1017_v33 = vpop.f32.mrb[5].mxu1 }
 0x26a   : > { %2313 = vtanh.f32 %v1195_v26  ;;  %v1176_v51 = vadd.f32 %v1144_v28, %v3316_v43  ;;  %v1145_v57 = vmul.f32 0.044715, %v1113_v30  ;;  %v3344_v52 = vadd.f32 %v2197_v47, %v3287_v49  ;;  %v2214_v44 = vpop.f32.mrb[6].mxu1 }
 0x26b   : > { %2315 = vtanh.f32 %v1193_v38  ;;  %v1210_v36 = vmul.f32 0.7978846, %v1178_v39  ;;  %v1179_v50 = vadd.f32 %v1147_v42, %v3322_v15  ;;  %v3348_v45 = vadd.f32 %v3287_v49, %v953_v9  ;;  %v1020_v0 = vpop.f32.mrb[7].mxu1  ;;  %v3350_v3 = vpop.f32.mrb[8].mxu0 }
 0x26c   : > { %v1208_v7 = vmul.f32 0.7978846, %v1176_v51  ;;  %v1177_v12 = vadd.f32 %v1145_v57, %v3328_v56  ;;  %v1070_v29 = vmul.f32 %v3344_v52, %v3344_v52  ;;  %v3356_v35 = vadd.f32 %v2198_v60, %v3287_v49  ;;  %v3358_v27 = vpop.f32.mrb[9].mxu0 }
 0x26d   : > { %2317 = vtanh.f32 %v1210_v36  ;;  %v1211_v20 = vmul.f32 0.7978846, %v1179_v50  ;;  %v1068_v8 = vmul.f32 %v3348_v45, %v3348_v45  ;;  %v3363_v41 = vadd.f32 %v3287_v49, %v956_v4  ;;  %v3365_v18 = vpop.f32.mrb[10].mxu0 }
 0x26e   : > { %2319 = vtanh.f32 %v1208_v7  ;;  %v1209_v61 = vmul.f32 0.7978846, %v1177_v12  ;;  %v1102_v25 = vmul.f32 %v1070_v29, %v3344_v52  ;;  %v1071_v55 = vmul.f32 %v3356_v35, %v3356_v35  ;;  %v3370_v2 = vpop.f32.mrb[11].mxu0 }
 0x26f   : > { %2321 = vtanh.f32 %v1211_v20  ;;  %v1100_v14 = vmul.f32 %v1068_v8, %v3348_v45  ;;  %v1069_v37 = vmul.f32 %v3363_v41, %v3363_v41  ;;  %v3376_v53 = vadd.f32 %v2213_v32, %v3287_v49 }
 0x270   : > { %2323 = vtanh.f32 %v1209_v61  ;;  %v1134_v13 = vmul.f32 0.044715, %v1102_v25  ;;  %v1103_v16 = vmul.f32 %v1071_v55, %v3356_v35  ;;  %v3380_v17 = vadd.f32 %v3287_v49, %v1017_v33  ;;  %v3382_v47 = vpop.f32.mrb[8].mxu1 }
 0x271   : > { %v1132_v34 = vmul.f32 0.044715, %v1100_v14  ;;  %v1101_v40 = vmul.f32 %v1069_v37, %v3363_v41  ;;  %v1086_v54 = vmul.f32 %v3376_v53, %v3376_v53  ;;  %v3388_v9 = vadd.f32 %v2214_v44, %v3287_v49  ;;  %v3390_v59 = vpop.f32.mrb[9].mxu1 }
 0x272   : > { %v2310_v46 = vpop.eup %2309  ;;  %v1166_v48 = vadd.f32 %v1134_v13, %v3344_v52  ;;  %v1135_v58 = vmul.f32 0.044715, %v1103_v16  ;;  %v1084_v60 = vmul.f32 %v3380_v17, %v3380_v17  ;;  %v3396_v19 = vadd.f32 %v3287_v49, %v1020_v0  ;;  %v3398_v62 = vpop.f32.mrb[10].mxu1 }
 0x273   : > { %v2312_v22 = vpop.eup %2311  ;;  %v1258_v63 = vadd.f32 1.0, %v2310_v46  ;;  %v1164_v4 = vadd.f32 %v1132_v34, %v3348_v45  ;;  %v1133_v6 = vmul.f32 0.044715, %v1101_v40  ;;  %v1118_v11 = vmul.f32 %v1086_v54, %v3376_v53  ;;  %v3402_v21 = vpop.f32.mrb[11].mxu1 }
 0x274   : > { %v3404_v24 = vpop.f32.mrb[12].mxu0  ;;  %v2314_v26 = vpop.eup %2313  ;;  %v1256_v28 = vadd.f32 1.0, %v2312_v22  ;;  %v1198_v30 = vmul.f32 0.7978846, %v1166_v48  ;;  %v1167_v32 = vadd.f32 %v1135_v58, %v3356_v35  ;;  %v1116_v38 = vmul.f32 %v1084_v60, %v3380_v17 }
 0x275   : > { %v3408_v39 = vpop.f32.mrb[13].mxu0  ;;  %v2316_v42 = vpop.eup %2315  ;;  %v1290_v33 = vmul.f32 0.5, %v1258_v63  ;;  %v1259_v51 = vadd.f32 1.0, %v2314_v26  ;;  %v1196_v57 = vmul.f32 0.7978846, %v1164_v4  ;;  %v1165_v44 = vadd.f32 %v1133_v6, %v3363_v41 }
 0x276   : > { %v3411_v36 = vpop.f32.mrb[14].mxu0  ;;  %v1288_v50 = vmul.f32 0.5, %v1256_v28  ;;  %v1257_v0 = vadd.f32 1.0, %v2316_v42  ;;  %2325 = vtanh.f32 %v1198_v30  ;;  %v1199_v7 = vmul.f32 0.7978846, %v1167_v32 }
 0x277   : > { %v3413_v12 = vpop.f32.mrb[15].mxu0  ;;  %v2318_v29 = vpop.eup %2317  ;;  %v1322_v20 = vmul.f32 %v1290_v33, %v3290_v10  ;;  %v1291_v8 = vmul.f32 0.5, %v1259_v51  ;;  %2327 = vtanh.f32 %v1196_v57  ;;  %v1197_v61 = vmul.f32 0.7978846, %v1165_v44 }
 0x278   : > { %v2320_v25 = vpop.eup %2319  ;;  %v1320_v55 = vmul.f32 %v1288_v50, %v3293_v23  ;;  %v1289_v14 = vmul.f32 0.5, %v1257_v0  ;;  %v1274_v37 = vadd.f32 1.0, %v2318_v29  ;;  %2329 = vtanh.f32 %v1199_v7  ;;  %v3417_v13 = vpop.f32.mrb[12].mxu1 }
 0x279   : > { %v2322_v16 = vpop.eup %2321  ;;  %v1323_v34 = vmul.f32 %v1291_v8, %v3298_v5  ;;  %v1272_v40 = vadd.f32 1.0, %v2320_v25  ;;  %2331 = vtanh.f32 %v1197_v61  ;;  %v1150_v54 = vmul.f32 0.044715, %v1118_v11  ;;  %v3420_v46 = vpop.f32.mrb[13].mxu1 }
 0x27a   : > { %v2324_v10 = vpop.eup %2323  ;;  %v1321_v48 = vmul.f32 %v1289_v14, %v3303_v1  ;;  %v1306_v58 = vmul.f32 0.5, %v1274_v37  ;;  %v1275_v60 = vadd.f32 1.0, %v2322_v16  ;;  %v1148_v22 = vmul.f32 0.044715, %v1116_v38  ;;  %v3423_v23 = vpop.f32.mrb[14].mxu1 }
 0x27b   : > { %v1353_v63 = vpack.c.bf16 %v1323_v34, %v1322_v20  ;;  %v1304_v4 = vmul.f32 0.5, %v1272_v40  ;;  %v1273_v6 = vadd.f32 1.0, %v2324_v10  ;;  %v1182_v26 = vadd.f32 %v1150_v54, %v3376_v53  ;;  %v3426_v28 = vpop.f32.mrb[15].mxu1 }
 0x27c   : > { %v1352_v5 = vpack.c.bf16 %v1321_v48, %v1320_v55  ;;  %v1338_v11 = vmul.f32 %v1306_v58, %v3312_v31  ;;  %v1307_v30 = vmul.f32 0.5, %v1275_v60  ;;  %v1180_v32 = vadd.f32 %v1148_v22, %v3380_v17 }
 0x27d   : > { %1369 = vst [vmem:[#allocation2 + $0x8] sm:$0xff] %v1353_v63  ;;  %v1336_v1 = vmul.f32 %v1304_v4, %v3316_v43  ;;  %v1305_v42 = vmul.f32 0.5, %v1273_v6  ;;  %v1214_v38 = vmul.f32 0.7978846, %v1182_v26  ;;  %v1087_v33 = vmul.f32 %v3388_v9, %v3388_v9 }
 0x27e   : > { %1368 = vst [vmem:[#allocation2] sm:$0xff] %v1352_v5  ;;  %v1339_v51 = vmul.f32 %v1307_v30, %v3322_v15  ;;  %v1212_v57 = vmul.f32 0.7978846, %v1180_v32  ;;  %v1085_v44 = vmul.f32 %v3396_v19, %v3396_v19  ;;  %v3438_v31 = vadd.f32 %v3350_v3, %v3287_v49 }
 0x27f   : > { %v1337_v50 = vmul.f32 %v1305_v42, %v3328_v56  ;;  %2333 = vtanh.f32 %v1214_v38  ;;  %v1119_v43 = vmul.f32 %v1087_v33, %v3388_v9  ;;  %v3444_v0 = vadd.f32 %v3287_v49, %v3358_v27 }
 0x280   : > { %v2326_v7 = vpop.eup %2325  ;;  %v1361_v29 = vpack.c.bf16 %v1339_v51, %v1338_v11  ;;  %2335 = vtanh.f32 %v1212_v57  ;;  %v1117_v15 = vmul.f32 %v1085_v44, %v3396_v19  ;;  %v1074_v20 = vmul.f32 %v3438_v31, %v3438_v31 }
 0x281   : > { %v2328_v8 = vpop.eup %2327  ;;  %v1360_v3 = vpack.c.bf16 %v1337_v50, %v1336_v1  ;;  %v1262_v61 = vadd.f32 1.0, %v2326_v7  ;;  %v1151_v25 = vmul.f32 0.044715, %v1119_v43  ;;  %v1072_v56 = vmul.f32 %v3444_v0, %v3444_v0 }
 0x282   : > { %v2330_v55 = vpop.eup %2329  ;;  %1377 = vst [vmem:[#allocation2 + $0x48] sm:$0xff] %v1361_v29  ;;  %v1260_v14 = vadd.f32 1.0, %v2328_v8  ;;  %v1149_v27 = vmul.f32 0.044715, %v1117_v15  ;;  %v1106_v37 = vmul.f32 %v1074_v20, %v3438_v31  ;;  %v3454_v16 = vadd.f32 %v3365_v18, %v3287_v49 }
 0x283   : > { %v2332_v34 = vpop.eup %2331  ;;  %1376 = vst [vmem:[#allocation2 + $0x40] sm:$0xff] %v1360_v3  ;;  %v1294_v40 = vmul.f32 0.5, %v1262_v61  ;;  %v1263_v54 = vadd.f32 1.0, %v2330_v55  ;;  %v1183_v10 = vadd.f32 %v1151_v25, %v3388_v9  ;;  %v1104_v48 = vmul.f32 %v1072_v56, %v3444_v0 }
 0x284   : > { %v1292_v58 = vmul.f32 0.5, %v1260_v14  ;;  %v1261_v60 = vadd.f32 1.0, %v2332_v34  ;;  %v1181_v22 = vadd.f32 %v1149_v27, %v3396_v19  ;;  %v1138_v63 = vmul.f32 0.044715, %v1106_v37 }
 0x285   : > { %v1326_v4 = vmul.f32 %v1294_v40, %v3344_v52  ;;  %v1295_v6 = vmul.f32 0.5, %v1263_v54  ;;  %v1215_v26 = vmul.f32 0.7978846, %v1183_v10  ;;  %v1136_v5 = vmul.f32 0.044715, %v1104_v48 }
 0x286   : > { %v1324_v18 = vmul.f32 %v1292_v58, %v3348_v45  ;;  %v1293_v11 = vmul.f32 0.5, %v1261_v60  ;;  %v1213_v30 = vmul.f32 0.7978846, %v1181_v22  ;;  %v1170_v32 = vadd.f32 %v1138_v63, %v3438_v31 }
 0x287   : > { %v1327_v1 = vmul.f32 %v1295_v6, %v3356_v35  ;;  %2337 = vtanh.f32 %v1215_v26  ;;  %v1168_v42 = vadd.f32 %v1136_v5, %v3444_v0  ;;  %v1075_v38 = vmul.f32 %v3454_v16, %v3454_v16 }
 0x288   : > { %v1325_v33 = vmul.f32 %v1293_v11, %v3363_v41  ;;  %2339 = vtanh.f32 %v1213_v30  ;;  %v1202_v52 = vmul.f32 0.7978846, %v1170_v32  ;;  %v3469_v51 = vadd.f32 %v3287_v49, %v3370_v2 }
 0x289   : > { %v2334_v45 = vpop.eup %2333  ;;  %v1355_v57 = vpack.c.bf16 %v1327_v1, %v1326_v4  ;;  %v1200_v44 = vmul.f32 0.7978846, %v1168_v42  ;;  %v1107_v50 = vmul.f32 %v1075_v38, %v3454_v16  ;;  %v3474_v35 = vadd.f32 %v3382_v47, %v3287_v49 }
 0x28a   : > { %v2336_v43 = vpop.eup %2335  ;;  %v1354_v7 = vpack.c.bf16 %v1325_v33, %v1324_v18  ;;  %v1278_v29 = vadd.f32 1.0, %v2334_v45  ;;  %2341 = vtanh.f32 %v1202_v52  ;;  %v1073_v41 = vmul.f32 %v3469_v51, %v3469_v51 }
 0x28b   : > { %1371 = vst [vmem:[#allocation2 + $0x18] sm:$0xff] %v1355_v57  ;;  %v1276_v15 = vadd.f32 1.0, %v2336_v43  ;;  %2343 = vtanh.f32 %v1200_v44  ;;  %v1139_v2 = vmul.f32 0.044715, %v1107_v50  ;;  %v1090_v20 = vmul.f32 %v3474_v35, %v3474_v35 }
 0x28c   : > { %1370 = vst [vmem:[#allocation2 + $0x10] sm:$0xff] %v1354_v7  ;;  %v1310_v8 = vmul.f32 0.5, %v1278_v29  ;;  %v1105_v3 = vmul.f32 %v1073_v41, %v3469_v51  ;;  %v3483_v47 = vadd.f32 %v3287_v49, %v3390_v59  ;;  %v3487_v61 = vadd.f32 %v3398_v62, %v3287_v49 }
 0x28d   : > { %v1308_v25 = vmul.f32 0.5, %v1276_v15  ;;  %v1171_v56 = vadd.f32 %v1139_v2, %v3454_v16  ;;  %v1122_v55 = vmul.f32 %v1090_v20, %v3474_v35  ;;  %v3493_v14 = vadd.f32 %v3287_v49, %v3402_v21 }
 0x28e   : > { %v1342_v27 = vmul.f32 %v1310_v8, %v3376_v53  ;;  %v1137_v37 = vmul.f32 0.044715, %v1105_v3  ;;  %v1088_v59 = vmul.f32 %v3483_v47, %v3483_v47  ;;  %v1091_v34 = vmul.f32 %v3487_v61, %v3487_v61 }
 0x28f   : > { %v1340_v62 = vmul.f32 %v1308_v25, %v3380_v17  ;;  %v1203_v40 = vmul.f32 0.7978846, %v1171_v56  ;;  %v1154_v54 = vmul.f32 0.044715, %v1122_v55  ;;  %v1089_v10 = vmul.f32 %v3493_v14, %v3493_v14 }
 0x290   : > { %v1169_v48 = vadd.f32 %v1137_v37, %v3469_v51  ;;  %v1120_v21 = vmul.f32 %v1088_v59, %v3483_v47  ;;  %v1123_v53 = vmul.f32 %v1091_v34, %v3487_v61  ;;  %v3508_v58 = vadd.f32 %v3404_v24, %v3287_v49 }
 0x291   : > { %v2338_v60 = vpop.eup %2337  ;;  %2345 = vtanh.f32 %v1203_v40  ;;  %v1186_v22 = vadd.f32 %v1154_v54, %v3474_v35  ;;  %v1121_v17 = vmul.f32 %v1089_v10, %v3493_v14  ;;  %v3514_v63 = vadd.f32 %v3287_v49, %v3408_v39 }
 0x292   : > { %v2340_v4 = vpop.eup %2339  ;;  %v1279_v6 = vadd.f32 1.0, %v2338_v60  ;;  %v1201_v26 = vmul.f32 0.7978846, %v1169_v48  ;;  %v1152_v5 = vmul.f32 0.044715, %v1120_v21  ;;  %v1078_v18 = vmul.f32 %v3508_v58, %v3508_v58 }
 0x293   : > { %v1277_v11 = vadd.f32 1.0, %v2340_v4  ;;  %v1218_v24 = vmul.f32 0.7978846, %v1186_v22  ;;  %v1155_v30 = vmul.f32 0.044715, %v1123_v53  ;;  %v1076_v32 = vmul.f32 %v3514_v63, %v3514_v63 }
 0x294   : > { %v2342_v1 = vpop.eup %2341  ;;  %v1311_v42 = vmul.f32 0.5, %v1279_v6  ;;  %2347 = vtanh.f32 %v1201_v26  ;;  %v1184_v38 = vadd.f32 %v1152_v5, %v3483_v47  ;;  %v1153_v39 = vmul.f32 0.044715, %v1121_v17 }
 0x295   : > { %v2344_v33 = vpop.eup %2343  ;;  %v1309_v52 = vmul.f32 0.5, %v1277_v11  ;;  %v1266_v45 = vadd.f32 1.0, %v2342_v1  ;;  %2349 = vtanh.f32 %v1218_v24  ;;  %v1187_v57 = vadd.f32 %v1155_v30, %v3487_v61 }
 0x296   : > { %v1343_v44 = vmul.f32 %v1311_v42, %v3388_v9  ;;  %v1264_v50 = vadd.f32 1.0, %v2344_v33  ;;  %v1216_v43 = vmul.f32 0.7978846, %v1184_v38  ;;  %v1185_v7 = vadd.f32 %v1153_v39, %v3493_v14 }
 0x297   : > { %v1341_v29 = vmul.f32 %v1309_v52, %v3396_v19  ;;  %v1298_v41 = vmul.f32 0.5, %v1266_v45  ;;  %v1219_v15 = vmul.f32 0.7978846, %v1187_v57  ;;  %v1110_v2 = vmul.f32 %v1078_v18, %v3508_v58 }
 0x298   : > { %v1363_v20 = vpack.c.bf16 %v1343_v44, %v1342_v27  ;;  %v1296_v8 = vmul.f32 0.5, %v1264_v50  ;;  %2351 = vtanh.f32 %v1216_v43  ;;  %v1217_v3 = vmul.f32 0.7978846, %v1185_v7 }
 0x299   : > { %v1362_v25 = vpack.c.bf16 %v1341_v29, %v1340_v62  ;;  %2353 = vtanh.f32 %v1219_v15  ;;  %v1142_v56 = vmul.f32 0.044715, %v1110_v2  ;;  %v1330_v9 = vmul.f32 %v1298_v41, %v3438_v31 }
 0x29a   : > { %1379 = vst [vmem:[#allocation2 + $0x58] sm:$0xff] %v1363_v20  ;;  %2355 = vtanh.f32 %v1217_v3  ;;  %v1108_v55 = vmul.f32 %v1076_v32, %v3514_v63  ;;  %v3530_v19 = vadd.f32 %v3411_v36, %v3287_v49  ;;  %v3535_v59 = vadd.f32 %v3287_v49, %v3413_v12 }
 0x29b   : > { %v2346_v37 = vpop.eup %2345  ;;  %1378 = vst [vmem:[#allocation2 + $0x50] sm:$0xff] %v1362_v25  ;;  %v1174_v27 = vadd.f32 %v1142_v56, %v3508_v58  ;;  %v3539_v34 = vadd.f32 %v3417_v13, %v3287_v49  ;;  %v3543_v31 = vadd.f32 %v3287_v49, %v3420_v46  ;;  %v1328_v62 = vmul.f32 %v1296_v8, %v3444_v0 }
 0x29c   : > { %v1267_v36 = vadd.f32 1.0, %v2346_v37  ;;  %v1140_v40 = vmul.f32 0.044715, %v1108_v55  ;;  %v1079_v54 = vmul.f32 %v3530_v19, %v3530_v19  ;;  %v1077_v12 = vmul.f32 %v3535_v59, %v3535_v59 }
 0x29d   : > { %v1206_v10 = vmul.f32 0.7978846, %v1174_v27  ;;  %v1094_v48 = vmul.f32 %v3539_v34, %v3539_v34  ;;  %v1092_v13 = vmul.f32 %v3543_v31, %v3543_v31  ;;  %v3558_v60 = vadd.f32 %v3423_v23, %v3287_v49 }
 0x29e   : > { %v2348_v21 = vpop.eup %2347  ;;  %v1299_v46 = vmul.f32 0.5, %v1267_v36  ;;  %v1172_v53 = vadd.f32 %v1140_v40, %v3514_v63  ;;  %v1111_v0 = vmul.f32 %v1079_v54, %v3530_v19  ;;  %v1109_v4 = vmul.f32 %v1077_v12, %v3535_v59 }
 0x29f   : > { %v2350_v22 = vpop.eup %2349  ;;  %v1265_v17 = vadd.f32 1.0, %v2348_v21  ;;  %2357 = vtanh.f32 %v1206_v10  ;;  %v1126_v6 = vmul.f32 %v1094_v48, %v3539_v34  ;;  %v1124_v1 = vmul.f32 %v1092_v13, %v3543_v31 }
 0x2a0   : > { %v1331_v26 = vmul.f32 %v1299_v46, %v3454_v16  ;;  %v1282_v5 = vadd.f32 1.0, %v2350_v22  ;;  %v1204_v18 = vmul.f32 0.7978846, %v1172_v53  ;;  %v1143_v11 = vmul.f32 0.044715, %v1111_v0 }
 0x2a1   : > { %v1297_v24 = vmul.f32 0.5, %v1265_v17  ;;  %v1141_v30 = vmul.f32 0.044715, %v1109_v4  ;;  %v1158_v32 = vmul.f32 0.044715, %v1126_v6  ;;  %v1095_v39 = vmul.f32 %v3558_v60, %v3558_v60 }
 0x2a2   : > { %v2352_v42 = vpop.eup %2351  ;;  %v1357_v23 = vpack.c.bf16 %v1331_v26, %v1330_v9  ;;  %2359 = vtanh.f32 %v1204_v18  ;;  %v1175_v38 = vadd.f32 %v1143_v11, %v3530_v19  ;;  %v1314_v50 = vmul.f32 0.5, %v1282_v5 }
 0x2a3   : > { %v2354_v33 = vpop.eup %2353  ;;  %v1329_v52 = vmul.f32 %v1297_v24, %v3469_v51  ;;  %v1280_v16 = vadd.f32 1.0, %v2352_v42  ;;  %v1173_v45 = vadd.f32 %v1141_v30, %v3535_v59  ;;  %v1190_v57 = vadd.f32 %v1158_v32, %v3539_v34 }
 0x2a4   : > { %v2356_v44 = vpop.eup %2355  ;;  %1373 = vst [vmem:[#allocation2 + $0x28] sm:$0xff] %v1357_v23  ;;  %v1283_v43 = vadd.f32 1.0, %v2354_v33  ;;  %v1207_v7 = vmul.f32 0.7978846, %v1175_v38  ;;  %v1156_v29 = vmul.f32 0.044715, %v1124_v1  ;;  %v1127_v56 = vmul.f32 %v1095_v39, %v3558_v60 }
 0x2a5   : > { %v1356_v41 = vpack.c.bf16 %v1329_v52, %v1328_v62  ;;  %v1312_v15 = vmul.f32 0.5, %v1280_v16  ;;  %v1281_v2 = vadd.f32 1.0, %v2356_v44  ;;  %v1205_v20 = vmul.f32 0.7978846, %v1173_v45 }
 0x2a6   : > { %v1315_v8 = vmul.f32 0.5, %v1283_v43  ;;  %2361 = vtanh.f32 %v1207_v7  ;;  %v1222_v3 = vmul.f32 0.7978846, %v1190_v57  ;;  %v1188_v51 = vadd.f32 %v1156_v29, %v3543_v31 }
 0x2a7   : > { %1372 = vst [vmem:[#allocation2 + $0x20] sm:$0xff] %v1356_v41  ;;  %v1313_v25 = vmul.f32 0.5, %v1281_v2  ;;  %2363 = vtanh.f32 %v1205_v20  ;;  %v1346_v9 = vmul.f32 %v1314_v50, %v3474_v35  ;;  %v1053_v37 = vadd.f32 %v3287_v49, %v3426_v28 }
 0x2a8   : > { %v1347_v55 = vmul.f32 %v1315_v8, %v3487_v61  ;;  %v1344_v62 = vmul.f32 %v1312_v15, %v3483_v47  ;;  %2365 = vtanh.f32 %v1222_v3  ;;  %v1159_v40 = vmul.f32 0.044715, %v1127_v56 }
 0x2a9   : > { %v2358_v27 = vpop.eup %2357  ;;  %v1345_v36 = vmul.f32 %v1313_v25, %v3493_v14  ;;  %v1220_v10 = vmul.f32 0.7978846, %v1188_v51  ;;  %v1093_v12 = vmul.f32 %v1053_v37, %v1053_v37 }
 0x2aa   : > { %v1365_v54 = vpack.c.bf16 %v1347_v55, %v1346_v9  ;;  %v1191_v13 = vadd.f32 %v1159_v40, %v3558_v60  ;;  %v1270_v61 = vadd.f32 1.0, %v2358_v27 }
 0x2ab   : > { %v1364_v48 = vpack.c.bf16 %v1345_v36, %v1344_v62  ;;  %v1125_v35 = vmul.f32 %v1093_v12, %v1053_v37  ;;  %2367 = vtanh.f32 %v1220_v10 }
 0x2ac   : > { %v2360_v21 = vpop.eup %2359  ;;  %1381 = vst [vmem:[#allocation2 + $0x68] sm:$0xff] %v1365_v54  ;;  %v1223_v46 = vmul.f32 0.7978846, %v1191_v13  ;;  %v1302_v0 = vmul.f32 0.5, %v1270_v61 }
 0x2ad   : > { %1380 = vst [vmem:[#allocation2 + $0x60] sm:$0xff] %v1364_v48  ;;  %v1268_v49 = vadd.f32 1.0, %v2360_v21  ;;  %v1157_v28 = vmul.f32 0.044715, %v1125_v35 }
 0x2ae   : > { %2369 = vtanh.f32 %v1223_v46  ;;  %v1334_v11 = vmul.f32 %v1302_v0, %v3508_v58 }
 0x2af   : > { %v1189_v14 = vadd.f32 %v1157_v28, %v1053_v37  ;;  %v1300_v17 = vmul.f32 0.5, %v1268_v49 }
 0x2b0   : > { %v2362_v47 = vpop.eup %2361 }
 0x2b1   : > { %v2364_v53 = vpop.eup %2363  ;;  %v1271_v22 = vadd.f32 1.0, %v2362_v47  ;;  %v1221_v6 = vmul.f32 0.7978846, %v1189_v14  ;;  %v1332_v30 = vmul.f32 %v1300_v17, %v3514_v63 }
 0x2b2   : > { %v1269_v4 = vadd.f32 1.0, %v2364_v53  ;;  %v2366_v26 = vpop.eup %2365 }
 0x2b3   : > { %v1303_v5 = vmul.f32 0.5, %v1271_v22  ;;  %2371 = vtanh.f32 %v1221_v6  ;;  %v1286_v1 = vadd.f32 1.0, %v2366_v26 }
 0x2b4   : > { %v1301_v18 = vmul.f32 0.5, %v1269_v4 }
 0x2b5   : > { %v1335_v24 = vmul.f32 %v1303_v5, %v3530_v19  ;;  %v2368_v23 = vpop.eup %2367  ;;  %v1318_v33 = vmul.f32 0.5, %v1286_v1 }
 0x2b6   : > { %v1333_v32 = vmul.f32 %v1301_v18, %v3535_v59  ;;  %v1284_v16 = vadd.f32 1.0, %v2368_v23 }
 0x2b7   : > { %v1359_v42 = vpack.c.bf16 %v1335_v24, %v1334_v11  ;;  %v1350_v58 = vmul.f32 %v1318_v33, %v3539_v34 }
 0x2b8   : > { %v1358_v38 = vpack.c.bf16 %v1333_v32, %v1332_v30  ;;  %v2370_v39 = vpop.eup %2369  ;;  %v1316_v44 = vmul.f32 0.5, %v1284_v16 }
 0x2b9   : > { %1375 = vst [vmem:[#allocation2 + $0x38] sm:$0xff] %v1359_v42  ;;  %v1287_v52 = vadd.f32 1.0, %v2370_v39 }
 0x2ba   : > { %1374 = vst [vmem:[#allocation2 + $0x30] sm:$0xff] %v1358_v38  ;;  %v1348_v43 = vmul.f32 %v1316_v44, %v3543_v31 }
 0x2bb   : > { %v1319_v45 = vmul.f32 0.5, %v1287_v52 }
 0x2bd   : > { %v2372_v57 = vpop.eup %2371  ;;  %v1351_v19 = vmul.f32 %v1319_v45, %v3558_v60 }
 0x2be   : > { %v1285_v63 = vadd.f32 1.0, %v2372_v57 }
 0x2bf   : > { %v1367_v50 = vpack.c.bf16 %v1351_v19, %v1350_v58 }
 0x2c0   : > { %v1317_v59 = vmul.f32 0.5, %v1285_v63 }
 0x2c1   : > { %1383 = vst [vmem:[#allocation2 + $0x78] sm:$0xff] %v1367_v50 }
 0x2c2   : > { %v1349_v7 = vmul.f32 %v1317_v59, %v1053_v37 }
 0x2c4   : > { %v1366_v29 = vpack.c.bf16 %v1349_v7, %v1348_v43 }
 0x2c6   : > { %1382 = vst [vmem:[#allocation2 + $0x70] sm:$0xff] %v1366_v29 }
 0x2c7 PF: > { %v2373_v34 = vld [vmem:[%s2724_s22 + $0x4] ss:$8 sps:$4 sm:$0xff]   ;;  %v2375_v41 = vld [vmem:[%s2724_s22] ss:$8 sps:$4 sm:$0xff]   ;;  %v2551_v60 = vmov 0   ;;  %v1402_v10 = vld [vmem:[#allocation2 + $0x50] sm:$0xff] }
 0x2c8   : > { %1536 = vmatprep.mubr.bf16.mxu0 %v2551_v60  ;;  %1626 = vmatprep.mubr.bf16.mxu1 %v2551_v60  ;;  %v2376_v31 = vld [vmem:[%s2724_s22 + $0x14] ss:$8 sps:$4 sm:$0xff]   ;;  %v2378_v15 = vld [vmem:[%s2724_s22 + $0x10] ss:$8 sps:$4 sm:$0xff]   ;;  %v2379_v2 = vld [vmem:[%s2724_s22 + $0x24] ss:$8 sps:$4 sm:$0xff]  }
 0x2c9   : > { %1504 = vmatprep.subr.bf16.mxu0 %v2373_v34  ;;  %2225 = vmatprep.subr.bf16.mxu1 %v2373_v34  ;;  %v2381_v20 = vld [vmem:[%s2724_s22 + $0x20] ss:$8 sps:$4 sm:$0xff]   ;;  %v2382_v8 = vld [vmem:[%s2724_s22 + $0x34] ss:$8 sps:$4 sm:$0xff]   ;;  %v2384_v3 = vld [vmem:[%s2724_s22 + $0x30] ss:$8 sps:$4 sm:$0xff]  }
 0x2ca   : > { %1505 = vmatpush1.bf16.msra.mxu0 %v2375_v41  ;;  %2233 = vmatpush1.bf16.msra.mxu1 %v2375_v41  ;;  %v2385_v51 = vld [vmem:[%s2724_s22 + $0x44] ss:$8 sps:$4 sm:$0xff]   ;;  %v2387_v25 = vld [vmem:[%s2724_s22 + $0x40] ss:$8 sps:$4 sm:$0xff]   ;;  %v2388_v56 = vld [vmem:[%s2724_s22 + $0x54] ss:$8 sps:$4 sm:$0xff]  }
 0x2cb   : > { %1506 = vmatprep.subr.bf16.mxu0 %v2376_v31  ;;  %2226 = vmatprep.subr.bf16.mxu1 %v2376_v31  ;;  %v2390_v9 = vld [vmem:[%s2724_s22 + $0x50] ss:$8 sps:$4 sm:$0xff]   ;;  %v2391_v55 = vld [vmem:[%s2724_s22 + $0x64] ss:$8 sps:$4 sm:$0xff]   ;;  %v2393_v37 = vld [vmem:[%s2724_s22 + $0x60] ss:$8 sps:$4 sm:$0xff]  }
 0x2cc   : > { %v2394_v27 = vld [vmem:[%s2724_s22 + $0x74] ss:$8 sps:$4 sm:$0xff]   ;;  %v2396_v62 = vld [vmem:[%s2724_s22 + $0x70] ss:$8 sps:$4 sm:$0xff]   ;;  %v1392_v36 = vld [vmem:[#allocation2] sm:$0xff]  ;;  %vm1843_vm9 = vcmask 1041409  }
 0x2cd   : > { %v1401_v40 = vld [vmem:[#allocation2 + $0x48] sm:$0xff]  ;;  %v1394_v12 = vld [vmem:[#allocation2 + $0x10] sm:$0xff]  ;;  %v1403_v48 = vld [vmem:[#allocation2 + $0x58] sm:$0xff]  ;;  %s2552_s11 = smov [#allocation8]   ;;  %p2259_p3 = scmp.eq.s32.totalorder %s2612_s28, 3 }
 0x2ce   : > { %1507 = vmatpush1.bf16.msra.mxu0 %v2378_v15  ;;  %2234 = vmatpush1.bf16.msra.mxu1 %v2378_v15  ;;  %v1393_v54 = vld [vmem:[#allocation2 + $0x8] sm:$0xff]  ;;  %v1395_v13 = vld [vmem:[#allocation2 + $0x18] sm:$0xff]  ;;  %v1404_v21 = vld [vmem:[#allocation2 + $0x60] sm:$0xff] }
 0x2cf   : > { %1508 = vmatprep.subr.bf16.mxu0 %v2379_v2  ;;  %2227 = vmatprep.subr.bf16.mxu1 %v2379_v2  ;;  %v1396_v35 = vld [vmem:[#allocation2 + $0x20] sm:$0xff]  ;;  %v1405_v61 = vld [vmem:[#allocation2 + $0x68] sm:$0xff]  ;;  %v1406_v49 = vld [vmem:[#allocation2 + $0x70] sm:$0xff] }
 0x2d0   : > { %v1397_v46 = vld [vmem:[#allocation2 + $0x28] sm:$0xff]  ;;  %v1398_v28 = vld [vmem:[#allocation2 + $0x30] sm:$0xff]  ;;  %v1407_v47 = vld [vmem:[#allocation2 + $0x78] sm:$0xff] }
 0x2d1   : > { %v1399_v14 = vld [vmem:[#allocation2 + $0x38] sm:$0xff]  ;;  %v1400_v53 = vld [vmem:[#allocation2 + $0x40] sm:$0xff]  ;;  %v2399_v17 = vld [vmem:[%s2730_s19 + $0x48] sm:$0xff]  }
 0x2d2   : > { %1509 = vmatpush1.bf16.msra.mxu0 %v2381_v20  ;;  %2235 = vmatpush1.bf16.msra.mxu1 %v2381_v20  ;;  %v2397_v0 = vld [vmem:[%s2730_s19 + $0x40] sm:$0xff]   ;;  %v2400_v4 = vld [vmem:[%s2730_s19 + $0x8] sm:$0xff]   ;;  %v2401_v6 = vld [vmem:[%s2730_s19 + $0x50] sm:$0xff]  }
 0x2d3   : > { %1510 = vmatprep.subr.bf16.mxu0 %v2382_v8  ;;  %2228 = vmatprep.subr.bf16.mxu1 %v2382_v8  ;;  %v2398_v22 = vld [vmem:[%s2730_s19] sm:$0xff]   ;;  %v2402_v26 = vld [vmem:[%s2730_s19 + $0x10] sm:$0xff]   ;;  %v2403_v5 = vld [vmem:[%s2730_s19 + $0x58] sm:$0xff]  }
 0x2d4   : > { %v2404_v18 = vld [vmem:[%s2730_s19 + $0x18] sm:$0xff]   ;;  %v2405_v11 = vld [vmem:[%s2730_s19 + $0x60] sm:$0xff]   ;;  %v2407_v30 = vld [vmem:[%s2730_s19 + $0x68] sm:$0xff]  }
 0x2d5   : > { %v2406_v24 = vld [vmem:[%s2730_s19 + $0x20] sm:$0xff]   ;;  %v2408_v32 = vld [vmem:[%s2730_s19 + $0x28] sm:$0xff]   ;;  %v2409_v1 = vld [vmem:[%s2730_s19 + $0x70] sm:$0xff]  }
 0x2d6   : > { %1511 = vmatpush1.bf16.msra.mxu0 %v2384_v3  ;;  %2236 = vmatpush1.bf16.msra.mxu1 %v2384_v3  ;;  %v2410_v42 = vld [vmem:[%s2730_s19 + $0x30] sm:$0xff]   ;;  %v2411_v23 = vld [vmem:[%s2730_s19 + $0x78] sm:$0xff]  }
 0x2d7   : > { %1512 = vmatprep.subr.bf16.mxu0 %v2385_v51  ;;  %2229 = vmatprep.subr.bf16.mxu1 %v2385_v51  ;;  %v2412_v38 = vld [vmem:[%s2730_s19 + $0x38] sm:$0xff]  }
 0x2da   : > { %1513 = vmatpush1.bf16.msra.mxu0 %v2387_v25  ;;  %2237 = vmatpush1.bf16.msra.mxu1 %v2387_v25 }
 0x2db   : > { %1514 = vmatprep.subr.bf16.mxu0 %v2388_v56  ;;  %2230 = vmatprep.subr.bf16.mxu1 %v2388_v56 }
 0x2de   : > { %1515 = vmatpush1.bf16.msra.mxu0 %v2390_v9  ;;  %2238 = vmatpush1.bf16.msra.mxu1 %v2390_v9 }
 0x2df   : > { %1516 = vmatprep.subr.bf16.mxu0 %v2391_v55  ;;  %2231 = vmatprep.subr.bf16.mxu1 %v2391_v55 }
 0x2e2   : > { %1517 = vmatpush1.bf16.msra.mxu0 %v2393_v37  ;;  %2239 = vmatpush1.bf16.msra.mxu1 %v2393_v37 }
 0x2e3   : > { %1518 = vmatprep.subr.bf16.mxu0 %v2394_v27  ;;  %2232 = vmatprep.subr.bf16.mxu1 %v2394_v27 }
 0x2e6   : > { %1519 = vmatpush1.bf16.msra.mxu0 %v2396_v62  ;;  %2240 = vmatpush1.bf16.msra.mxu1 %v2396_v62 }
 0x2e7   : > { %2167 = vmatprep.subr.bf16.mxu1 %v2397_v0 }
 0x2e9   : > { %1537 = vmatmul.mubr.bf16.vlgmr.msra.gmra.mrb[0].mxu0 %v1392_v36  ;;  %1627 = vmatmul.mubr.bf16.vlgmr.msra.gmra.mrb[0].mxu1 %v1401_v40 }
 0x2ea   : > { %1546 = vmatprep.mubr.bf16.mxu0 %v2551_v60  ;;  %1636 = vmatprep.mubr.bf16.mxu1 %v2551_v60 }
 0x2eb   : > { %2168 = vmatpush3.bf16.msra.mxu1 %v2398_v22 }
 0x2ec   : > { %2169 = vmatprep.subr.bf16.mxu1 %v2399_v17 }
 0x2ef   : > { %2170 = vmatpush3.bf16.msra.mxu1 %v2400_v4 }
 0x2f0   : > { %2171 = vmatprep.subr.bf16.mxu1 %v2401_v6 }
 0x2f1   : > { %1547 = vmatmul.mubr.bf16.gmra.mrb[4].mxu0 %v1393_v54  ;;  %1637 = vmatmul.mubr.bf16.gmra.mrb[4].mxu1 %v1402_v10 }
 0x2f2   : > { %1556 = vmatprep.mubr.bf16.mxu0 %v2551_v60  ;;  %1646 = vmatprep.mubr.bf16.mxu1 %v2551_v60 }
 0x2f3   : > { %2172 = vmatpush3.bf16.msra.mxu1 %v2402_v26 }
 0x2f4   : > { %2173 = vmatprep.subr.bf16.mxu1 %v2403_v5 }
 0x2f7   : > { %2174 = vmatpush3.bf16.msra.mxu1 %v2404_v18 }
 0x2f8   : > { %2175 = vmatprep.subr.bf16.mxu1 %v2405_v11 }
 0x2f9   : > { %1557 = vmatmul.mubr.bf16.gmra.mrb[8].mxu0 %v1394_v12  ;;  %1647 = vmatmul.mubr.bf16.gmra.mrb[8].mxu1 %v1403_v48 }
 0x2fa   : > { %1566 = vmatprep.mubr.bf16.mxu0 %v2551_v60  ;;  %1656 = vmatprep.mubr.bf16.mxu1 %v2551_v60 }
 0x2fb   : > { %2176 = vmatpush3.bf16.msra.mxu1 %v2406_v24 }
 0x2fc   : > { %2177 = vmatprep.subr.bf16.mxu1 %v2407_v30 }
 0x2ff   : > { %2178 = vmatpush3.bf16.msra.mxu1 %v2408_v32 }
 0x300   : > { %2179 = vmatprep.subr.bf16.mxu1 %v2409_v1 }
 0x301   : > { %1567 = vmatmul.mubr.bf16.gmra.mrb[12].mxu0 %v1395_v13  ;;  %1657 = vmatmul.mubr.bf16.gmra.mrb[12].mxu1 %v1404_v21 }
 0x302   : > { %1576 = vmatprep.mubr.bf16.mxu0 %v2551_v60  ;;  %1666 = vmatprep.mubr.bf16.mxu1 %v2551_v60 }
 0x303   : > { %2180 = vmatpush3.bf16.msra.mxu1 %v2410_v42 }
 0x304   : > { %2181 = vmatprep.subr.bf16.mxu1 %v2411_v23 }
 0x307   : > { %2182 = vmatpush3.bf16.msra.mxu1 %v2412_v38 }
 0x309   : > { %1577 = vmatmul.mubr.bf16.gmra.mrb[16].mxu0 %v1396_v35  ;;  %1667 = vmatmul.mubr.bf16.gmra.mrb[16].mxu1 %v1405_v61 }
 0x30a   : > { %1586 = vmatprep.mubr.bf16.mxu0 %v2551_v60  ;;  %1676 = vmatprep.mubr.bf16.mxu1 %v2551_v60 }
 0x311   : > { %1587 = vmatmul.mubr.bf16.gmra.mrb[20].mxu0 %v1397_v46  ;;  %1677 = vmatmul.mubr.bf16.gmra.mrb[20].mxu1 %v1406_v49 }
 0x312   : > { %1596 = vmatprep.mubr.bf16.mxu0 %v2551_v60  ;;  %1686 = vmatprep.mubr.bf16.mxu1 %v2551_v60 }
 0x319   : > { %1597 = vmatmul.mubr.bf16.gmra.mrb[24].mxu0 %v1398_v28  ;;  %1687 = vmatmul.mubr.bf16.gmra.mrb[24].mxu1 %v1407_v47 }
 0x31a   : > { %1606 = vmatprep.mubr.bf16.mxu0 %v2551_v60 }
 0x321   : > { %1607 = vmatmul.mubr.bf16.gmra.mrb[28].mxu0 %v1399_v14 }
 0x322   : > { %1616 = vmatprep.mubr.bf16.mxu0 %v2551_v60 }
 0x329   : > { %1617 = vmatmul.mubr.bf16.gmra.mrb[32].mxu0 %v1400_v53 }
 0x3bc   : > { %v1538_v39 = vpop.f32.mrb[0].mxu0  ;;  %v3634_v33 = vpop.f32.mrb[0].mxu1 }
 0x3bd   : > { %v1540_v52 = vpop.f32.mrb[1].mxu0  ;;  %v3636_v16 = vpop.f32.mrb[1].mxu1 }
 0x3be   : > { %v1542_v45 = vpop.f32.mrb[2].mxu0  ;;  %v3638_v57 = vpop.f32.mrb[2].mxu1 }
 0x3bf   : > { %v1697_v58 = vmax.f32 %v1538_v39, %v1542_v45  ;;  %v1544_v19 = vpop.f32.mrb[3].mxu0  ;;  %v3640_v44 = vpop.f32.mrb[3].mxu1 }
 0x3c0   : > { %v1718_v63 = vmax.f32 %v1540_v52, %v1544_v19 }
 0x3c4   : > { %v1548_v50 = vpop.f32.mrb[4].mxu0  ;;  %v3642_v59 = vpop.f32.mrb[4].mxu1 }
 0x3c5   : > { %v1698_v43 = vmax.f32 %v1697_v58, %v1548_v50  ;;  %v1550_v7 = vpop.f32.mrb[5].mxu0  ;;  %v3644_v29 = vpop.f32.mrb[5].mxu1 }
 0x3c6   : > { %v1719_v34 = vmax.f32 %v1718_v63, %v1550_v7  ;;  %v1552_v41 = vpop.f32.mrb[6].mxu0  ;;  %v3646_v60 = vpop.f32.mrb[6].mxu1 }
 0x3c7   : > { %v1699_v31 = vmax.f32 %v1698_v43, %v1552_v41  ;;  %v1554_v15 = vpop.f32.mrb[7].mxu0  ;;  %v3648_v2 = vpop.f32.mrb[7].mxu1 }
 0x3c8   : > { %v1720_v20 = vmax.f32 %v1719_v34, %v1554_v15 }
 0x3cc   : > { %v1558_v8 = vpop.f32.mrb[8].mxu0  ;;  %v3650_v3 = vpop.f32.mrb[8].mxu1 }
 0x3cd   : > { %v1700_v51 = vmax.f32 %v1699_v31, %v1558_v8  ;;  %v1560_v25 = vpop.f32.mrb[9].mxu0  ;;  %v3652_v56 = vpop.f32.mrb[9].mxu1 }
 0x3ce   : > { %v1721_v9 = vmax.f32 %v1720_v20, %v1560_v25  ;;  %v1562_v55 = vpop.f32.mrb[10].mxu0  ;;  %v3654_v37 = vpop.f32.mrb[10].mxu1 }
 0x3cf   : > { %v1701_v27 = vmax.f32 %v1700_v51, %v1562_v55  ;;  %v1564_v62 = vpop.f32.mrb[11].mxu0  ;;  %v3656_v36 = vpop.f32.mrb[11].mxu1 }
 0x3d0   : > { %v1722_v40 = vmax.f32 %v1721_v9, %v1564_v62 }
 0x3d4   : > { %v1568_v54 = vpop.f32.mrb[12].mxu0  ;;  %v3658_v10 = vpop.f32.mrb[12].mxu1 }
 0x3d5   : > { %v1702_v12 = vmax.f32 %v1701_v27, %v1568_v54  ;;  %v1570_v48 = vpop.f32.mrb[13].mxu0  ;;  %v3660_v13 = vpop.f32.mrb[13].mxu1 }
 0x3d6   : > { %v1723_v21 = vmax.f32 %v1722_v40, %v1570_v48  ;;  %v1572_v35 = vpop.f32.mrb[14].mxu0  ;;  %v3662_v61 = vpop.f32.mrb[14].mxu1 }
 0x3d7   : > { %v1703_v46 = vmax.f32 %v1702_v12, %v1572_v35  ;;  %v1574_v49 = vpop.f32.mrb[15].mxu0  ;;  %v3664_v28 = vpop.f32.mrb[15].mxu1 }
 0x3d8   : > { %v1724_v47 = vmax.f32 %v1723_v21, %v1574_v49 }
 0x3dc   : > { %v1578_v14 = vpop.f32.mrb[16].mxu0  ;;  %v3666_v53 = vpop.f32.mrb[16].mxu1 }
 0x3dd   : > { %v1704_v0 = vmax.f32 %v1703_v46, %v1578_v14  ;;  %v1580_v22 = vpop.f32.mrb[17].mxu0  ;;  %v3668_v17 = vpop.f32.mrb[17].mxu1 }
 0x3de   : > { %v1725_v4 = vmax.f32 %v1724_v47, %v1580_v22  ;;  %v1582_v6 = vpop.f32.mrb[18].mxu0  ;;  %v3670_v26 = vpop.f32.mrb[18].mxu1 }
 0x3df   : > { %v1705_v5 = vmax.f32 %v1704_v0, %v1582_v6  ;;  %v1584_v18 = vpop.f32.mrb[19].mxu0  ;;  %v3672_v11 = vpop.f32.mrb[19].mxu1 }
 0x3e0   : > { %v1726_v24 = vmax.f32 %v1725_v4, %v1584_v18 }
 0x3e4   : > { %v1588_v30 = vpop.f32.mrb[20].mxu0  ;;  %v1678_v32 = vpop.f32.mrb[20].mxu1 }
 0x3e5   : > { %v1706_v1 = vmax.f32 %v1705_v5, %v1588_v30  ;;  %v1590_v42 = vpop.f32.mrb[21].mxu0  ;;  %v1680_v23 = vpop.f32.mrb[21].mxu1 }
 0x3e6   : > { %v1727_v38 = vmax.f32 %v1726_v24, %v1590_v42  ;;  %v1592_v39 = vpop.f32.mrb[22].mxu0  ;;  %v3674_v52 = vpop.f32.mrb[22].mxu1 }
 0x3e7   : > { %v1707_v45 = vmax.f32 %v1706_v1, %v1592_v39  ;;  %v1594_v58 = vpop.f32.mrb[23].mxu0  ;;  %v1684_v19 = vpop.f32.mrb[23].mxu1 }
 0x3e8   : > { %v1728_v63 = vmax.f32 %v1727_v38, %v1594_v58 }
 0x3ec   : > { %v1598_v50 = vpop.f32.mrb[24].mxu0  ;;  %v1688_v43 = vpop.f32.mrb[24].mxu1 }
 0x3ed   : > { %v1708_v7 = vmax.f32 %v1707_v45, %v1598_v50  ;;  %v1600_v34 = vpop.f32.mrb[25].mxu0  ;;  %v1690_v41 = vpop.f32.mrb[25].mxu1 }
 0x3ee   : > { %v1729_v31 = vmax.f32 %v1728_v63, %v1600_v34  ;;  %v1602_v15 = vpop.f32.mrb[26].mxu0  ;;  %v1692_v20 = vpop.f32.mrb[26].mxu1 }
 0x3ef   : > { %v1709_v8 = vmax.f32 %v1708_v7, %v1602_v15  ;;  %v1604_v51 = vpop.f32.mrb[27].mxu0  ;;  %v1694_v25 = vpop.f32.mrb[27].mxu1 }
 0x3f0   : > { %v1730_v9 = vmax.f32 %v1729_v31, %v1604_v51 }
 0x3f4   : > { %v1608_v55 = vpop.f32.mrb[28].mxu0 }
 0x3f5   : > { %v1710_v27 = vmax.f32 %v1709_v8, %v1608_v55  ;;  %v1610_v62 = vpop.f32.mrb[29].mxu0 }
 0x3f6   : > { %v1731_v40 = vmax.f32 %v1730_v9, %v1610_v62  ;;  %v1612_v54 = vpop.f32.mrb[30].mxu0 }
 0x3f7   : > { %v1711_v12 = vmax.f32 %v1710_v27, %v1612_v54  ;;  %v1614_v48 = vpop.f32.mrb[31].mxu0 }
 0x3f8   : > { %v1732_v21 = vmax.f32 %v1731_v40, %v1614_v48 }
 0x3f9   : > { %v1712_v39 = vrot.slane %v1711_v12, 4 }
 0x3fb   : > { %v1713_v45 = vmax.f32 %v1711_v12, %v1712_v39  ;;  %v1797_v39 = vld [vmem:[#allocation8] sm:$0x3] }
 0x3fc   : > { %v1618_v35 = vpop.f32.mrb[32].mxu0 }
 0x3fd   : > { %v1620_v46 = vpop.f32.mrb[33].mxu0  ;;  %v1714_v63 = vrot.slane %v1713_v45, 2 }
 0x3fe   : > { %v1622_v49 = vpop.f32.mrb[34].mxu0 }
 0x3ff   : > { %v1739_v47 = vmax.f32 %v1618_v35, %v1622_v49  ;;  %v1624_v14 = vpop.f32.mrb[35].mxu0 }
 0x400   : > { %v1760_v0 = vmax.f32 %v1620_v46, %v1624_v14 }
 0x401   : > { %v1740_v22 = vmax.f32 %v1739_v47, %v3634_v33 }
 0x402   : > { %v1761_v4 = vmax.f32 %v1760_v0, %v3636_v16 }
 0x403   : > { %v1741_v6 = vmax.f32 %v1740_v22, %v3638_v57 }
 0x404   : > { %v1762_v5 = vmax.f32 %v1761_v4, %v3640_v44 }
 0x405   : > { %v1742_v18 = vmax.f32 %v1741_v6, %v3642_v59 }
 0x406   : > { %v1763_v24 = vmax.f32 %v1762_v5, %v3644_v29  ;;  %v1733_v29 = vrot.slane %v1732_v21, 4 }
 0x407   : > { %v1743_v30 = vmax.f32 %v1742_v18, %v3646_v60 }
 0x408   : > { %v1764_v1 = vmax.f32 %v1763_v24, %v3648_v2 }
 0x409   : > { %v1744_v42 = vmax.f32 %v1743_v30, %v3650_v3 }
 0x40a   : > { %v1765_v38 = vmax.f32 %v1764_v1, %v3652_v56 }
 0x40b   : > { %v1745_v33 = vmax.f32 %v1744_v42, %v3654_v37  ;;  %v1734_v37 = vmax.f32 %v1732_v21, %v1733_v29 }
 0x40c   : > { %v1766_v16 = vmax.f32 %v1765_v38, %v3656_v36 }
 0x40d   : > { %v1746_v57 = vmax.f32 %v1745_v33, %v3658_v10  ;;  %v1735_v50 = vrot.slane %v1734_v37, 2 }
 0x40e   : > { %v1767_v44 = vmax.f32 %v1766_v16, %v3660_v13  ;;  %v1783_v13 = vlaneseq }
 0x40f   : > { %v1747_v59 = vmax.f32 %v1746_v57, %v3662_v61  ;;  %v1736_v15 = vmax.f32 %v1734_v37, %v1735_v50 }
 0x410   : > { %v1768_v60 = vmax.f32 %v1767_v44, %v3664_v28  ;;  %v1784_v31 = vshrl.u32 %v1783_v13, 7 }
 0x411   : > { %v1748_v2 = vmax.f32 %v1747_v59, %v3666_v53  ;;  %v1715_v53 = vmax.f32 %v1713_v45, %v1714_v63 }
 0x412   : > { %v1769_v3 = vmax.f32 %v1768_v60, %v3668_v17  ;;  %v1789_v55 = vsub.s32 1, %v1784_v31 }
 0x413   : > { %v1749_v56 = vmax.f32 %v1748_v2, %v3670_v26  ;;  %v1716_v9 = vrot.slane %v1715_v53, 1 }
 0x414   : > { %v1770_v36 = vmax.f32 %v1769_v3, %v3672_v11  ;;  %v1785_v11 = vsub.s32 0, %v1784_v31 }
 0x415   : > { %v1750_v58 = vmax.f32 %v1749_v56, %v1678_v32  ;;  %v1717_v27 = vmax.f32 %v1715_v53, %v1716_v9 }
 0x416   : > { %v1771_v10 = vmax.f32 %v1770_v36, %v1680_v23  ;;  %v1781_v23 = vld [vmem:[%s343_s17] sm:$0x3]  ;;  %s1996_s17 = sshll.u32 %s2552_s11, 4  ;;  %s1997_s17 = int_to_ptr.vmem [resolvable:$true] %s1996_s17 }
 0x417   : > { %v1751_v61 = vmax.f32 %v1750_v58, %v3674_v52  ;;  %v1737_v52 = vrot.slane %v1736_v15, 1  ;;  %v1786_v62 = vrot.slane %v1781_v23, %v1785_v11  ;;  %s2473_s16 = scalar_lea.vmem %s1997_s17, 32  ;;  %p2480_p12 = scmp.lt.s32.totalorder %s1997_s17, %s1997_s17 }
 0x418   : > { %v1772_v7 = vmax.f32 %v1771_v10, %v1684_v19  ;;  %p2474_p6 = scmp.ne.s32.totalorder %s1997_s17, %s2473_s16  ;;  %p2481_p2 = scmp.lt.s32.totalorder %s2473_s16, %s2473_s16 }
 0x419   : > { %v1752_v28 = vmax.f32 %v1751_v61, %v1688_v43  ;;  %v1738_v40 = vmax.f32 %v1736_v15, %v1737_v52  ;;  %v1793_v21 = vadd.f32 %v1786_v62, %v1717_v27 }
 0x41a   : > { %v1773_v34 = vmax.f32 %v1772_v7, %v1690_v41  ;;  %p2475_p0 = pnand %p2474_p6, %p2259_p3  ;;  %p2482_p4 = por %p2481_p2, %p2480_p12 }
 0x41b   : > { %v1753_v17 = vmax.f32 %v1752_v28, %v1692_v20  ;;  %v1798_v0 = vpack.c.bf16 %v1793_v21, %v1793_v21 }
 0x41c   : > { %v1774_v8 = vmax.f32 %v1773_v34, %v1694_v25  ;;  %v1790_v25 = vrot.slane %v1781_v23, %v1789_v55  ;;  %p2476_p1 = pneg %p2475_p0 }
 0x41d   : > { %v1754_v26 = vrot.slane %v1753_v17, 4  ;;  %v1838_v24 = vunpack.c.l.b16 %v1798_v0 }
 0x41e   : > { %v1775_v51 = vrot.slane %v1774_v8, 4  ;;  %v1794_v46 = vadd.f32 %v1790_v25, %v1738_v40  ;;  %p2483_p5 = pnand %p2482_p4, %p2476_p1 }
 0x41f   : > { %v1755_v32 = vmax.f32 %v1753_v17, %v1754_v26 }
 0x420   : > { %v1776_v19 = vmax.f32 %v1774_v8, %v1775_v51  ;;  %v1799_v4 = vpack.c.bf16 %v1794_v46, %v1794_v46 }
 0x421   : > { %v1756_v43 = vrot.slane %v1755_v32, 2 }
 0x422   : > { %v1777_v41 = vrot.slane %v1776_v19, 2  ;;  %v1839_v1 = vunpack.c.l.b16 %v1799_v4 }
 0x423   : > { %v1757_v20 = vmax.f32 %v1755_v32, %v1756_v43 }
 0x424   : > { %v1778_v54 = vmax.f32 %v1776_v19, %v1777_v41 }
 0x425   : > { %v1758_v12 = vrot.slane %v1757_v20, 1 }
 0x426   : > { %v1779_v48 = vrot.slane %v1778_v54, 1 }
 0x427   : > { %v1759_v35 = vmax.f32 %v1757_v20, %v1758_v12 }
 0x428   : > { %v1780_v49 = vmax.f32 %v1778_v54, %v1779_v48 }
 0x429   : > { %v1795_v47 = vadd.f32 %v1786_v62, %v1759_v35 }
 0x42a   : > { %v1796_v14 = vadd.f32 %v1790_v25, %v1780_v49 }
 0x42b   : > { %v1800_v22 = vpack.c.bf16 %v1795_v47, %v1795_v47 }
 0x42c   : > { %v1801_v6 = vpack.c.bf16 %v1796_v14, %v1796_v14 }
 0x42d   : > { %v1840_v5 = vunpack.c.l.b16 %v1800_v22 }
 0x42e   : > { %v1841_v18 = vunpack.c.l.b16 %v1801_v6 }
 0x42f   : > { %v1842_v30 = vrot.slane %v1840_v5, 7 }
 0x430   : > { %v1845_v42 = vrot.slane %v1841_v18, 7 }
 0x431   : > { %v1844_v38 = vsel %vm1843_vm9, %v1842_v30, %v1838_v24 }
 0x432   : > { %v1846_v33 = vsel %vm1843_vm9, %v1845_v42, %v1839_v1  ;;  %v1847_v57 = vpack.c.b16 %v1844_v38, %v1844_v38 }
 0x433   : > { %v1848_v16 = vpack.c.b16 %v1846_v33, %v1846_v33 }
 0x435   : > { %1979 = vmatprep.mubr.bf16.mxu1 %v1848_v16 }
 0x436   : > { %1980 = vmatmul.mubr.bf16.vlgmr.msra.gmra.mrb[28].mxu1 %v1847_v57 }
 0x509   : > { %v2183_v44 = vpop.f32.mrb[28].mxu1 }
 0x50a   : > { %v2184_v59 = vpop.f32.mrb[29].mxu1 }
 0x50b   : > { %v2185_v29 = vadd.f32 %v2184_v59, %v2183_v44  ;;  %v2186_v60 = vpop.f32.mrb[30].mxu1 }
 0x50c   : > { %v2187_v2 = vpop.f32.mrb[31].mxu1 }
 0x50d   : > { %v1987_v3 = vadd.f32 %v2185_v29, %v1797_v39 }
 0x50f   : > { %1988 = vst [vmem:[#allocation8] sm:$0x3] %v1987_v3 }
 0x510   : > { %2486 = shalt.err (!%p2483_p5)
}
 0x511   : > { %s2487_s30 = scalar_lea.hbm %s3745_s7, 32 }
 0x512   : > { %p2488_p9 = scmp.ne.s32.totalorder %s3745_s7, %s2487_s30  ;;  %p2493_p7 = scmp.lt.u32.totalorder %s2487_s30, %s3745_s7 }
 0x514   : > { %p2489_p11 = pnand %p2488_p9, %p2259_p3 }
 0x516   : > { %p2490_p13 = pneg %p2489_p11 }
 0x518   : > { %p2495_p8 = pnand %p2493_p7, %p2490_p13 }
 0x51a   : > { %2498 = shalt.err (!%p2495_p8)
}
 0x51b   : > { %2248 = dma.vmem_to_hbm [thread:$0]  (%p2259_p3), %s1997_s17, 32, %s3745_s7, [#allocation5]  }
 0x51c   : > { %2524 = dma.done.wait (%p2259_p3), [#allocation5], 32  }
 0x51d   : > { %2526 = vsyncadd (%p2259_p3), [#allocation5], 4294967264 }
 0x51e PF: > { %p21_p10 = scmp.ge.s32.totalorder %s2615_s29, 6   ;;  %s3805_s24 = smov %s2533_s25 }
 0x51f   : > { %s3806_s25 = smov %s2537_s26  ;;  %s3807_s26 = smov %s2625_s9 }
 0x520   : > { %s3808_s27 = smov %s2615_s29  ;;  %23 = sbr.rel (!%p21_p10) target bundleno = 6 (0x6), region = 105 }
 0x527   :  { %2009 = vsyncpa [#allocation4], 1 }
 0x528   :  { %2011 = vsyncpa [#allocation4 + $0x1], 1 }
 0x529   :  { %2012 = vsyncpa [#allocation7], 1 }
 0x52a   :  { %2014 = vsyncpa [#allocation7 + $0x1], 1 }
 0x52b   :  { %2015 = vsyncpa [#allocation5], 1 }
 0x52c   :  { %2017 = vsyncpa [#allocation5 + $0x1], 1 }

</bundles_post_ra>
